<compile_context>
chip_gen: v7x
topology: tpu7x:2x2x1
jax: 0.10.0
libtpu: 0.0.40
codegen_flags: <defaults>
</compile_context>

<pallas_src>
import math
import functools

import jax
import jax.numpy as jnp
from jax import lax
from jax.experimental import pallas as pl
from jax.experimental.pallas import tpu as pltpu

# ---------------- small GPT-2 config ----------------
VOCAB = 256
N_POSITIONS = 64
N_EMBD = 128
N_HEAD = 4
N_LAYER = 2
LN_EPS = 1e-5

_GELU_C = math.sqrt(2.0 / math.pi)


def _layernorm_f32(x, g, b, eps):
    """LayerNorm in f32.  x: [M, D] f32, g/b: [1, D]."""
    mu = jnp.mean(x, axis=-1, keepdims=True)
    xc = x - mu
    var = jnp.mean(xc * xc, axis=-1, keepdims=True)
    return xc * lax.rsqrt(var + eps) * g.astype(jnp.float32) + b.astype(jnp.float32)


# ---------------- fused all-layers (+ ln_f) kernel, grid=(N_LAYER,) ----------------
def _layers_kernel(h_ref, lnf_g_ref, lnf_b_ref,
                   ln1_g_ref, ln1_b_ref, w_attn_ref, b_attn_ref,
                   w_proj_ref, b_proj_ref,
                   ln2_g_ref, ln2_b_ref, w_fc_ref, b_fc_ref,
                   w_mproj_ref, b_mproj_ref,
                   o_ref, res_ref, *, batch, seq, n_head, eps):
    D = h_ref.shape[1]
    H = n_head
    Dh = D // H
    BT = batch * seq
    scale = 1.0 / math.sqrt(Dh)
    l = pl.program_id(0)

    # residual stream lives in f32 VMEM scratch across the whole layer grid
    @pl.when(l == 0)
    def _():
        res_ref[...] = h_ref[...].astype(jnp.float32)

    h = res_ref[...]                                          # [BT, D] f32

    # ---- attention sub-block: h = h + proj(attn(ln1(h))) ----
    a_in = _layernorm_f32(h, ln1_g_ref[...], ln1_b_ref[...], eps)
    qkv = jnp.dot(a_in.astype(jnp.bfloat16), w_attn_ref[...],
                  preferred_element_type=jnp.float32) + b_attn_ref[...]   # [BT, 3D]

    # head-batched q/k/v: (H*B, T, Dh), head-major along the leading axis
    def gather_heads(off):
        parts = [qkv[:, off + hh * Dh: off + (hh + 1) * Dh].reshape(batch, seq, Dh)
                 for hh in range(H)]
        return jnp.concatenate(parts, axis=0).astype(jnp.bfloat16)

    q_g = gather_heads(0)
    k_g = gather_heads(D)
    v_g = gather_heads(2 * D)

    row = lax.broadcasted_iota(jnp.int32, (seq, seq), 0)
    col = lax.broadcasted_iota(jnp.int32, (seq, seq), 1)
    causal = (col <= row)[None]                               # [1, T, T], broadcast over heads

    # two batched einsums for all heads (instead of 2*H tiny MXU dispatches)
    s = jnp.einsum('gtd,gsd->gts', q_g, k_g,
                   preferred_element_type=jnp.float32) * scale
    s = jnp.where(causal, s, jnp.float32(-1e10))
    mx = jnp.max(s, axis=-1, keepdims=True)
    e = jnp.exp(s - mx)
    p = e * pl.reciprocal(jnp.sum(e, axis=-1, keepdims=True), approx=True)
    o_g = jnp.einsum('gts,gsd->gtd', p.astype(jnp.bfloat16), v_g,
                     preferred_element_type=jnp.float32)      # [H*B, T, Dh]

    # merge heads back to a lane-dense [BT, D] slab
    attn = jnp.concatenate(
        [o_g[hh * batch:(hh + 1) * batch].reshape(BT, Dh) for hh in range(H)], axis=-1)

    a = jnp.dot(attn.astype(jnp.bfloat16), w_proj_ref[...],
                preferred_element_type=jnp.float32) + b_proj_ref[...]
    h = h + a

    # ---- MLP sub-block: h = h + proj(gelu(fc(ln2(h)))) ----
    m_in = _layernorm_f32(h, ln2_g_ref[...], ln2_b_ref[...], eps)
    u = jnp.dot(m_in.astype(jnp.bfloat16), w_fc_ref[...],
                preferred_element_type=jnp.float32) + b_fc_ref[...]
    # GPT-2 tanh-approx GELU in f32 (bf16 variant possible on v6e/v7x; f32 needed on v5e)
    u = 0.5 * u * (1.0 + jnp.tanh(_GELU_C * (u + 0.044715 * u * u * u)))
    mlp = jnp.dot(u.astype(jnp.bfloat16), w_mproj_ref[...],
                  preferred_element_type=jnp.float32) + b_mproj_ref[...]
    h = h + mlp

    res_ref[...] = h

    # ln_f fused into the last layer's epilogue; output (HBM-facing) is bf16
    @pl.when(l == pl.num_programs(0) - 1)
    def _():
        hn = _layernorm_f32(h, lnf_g_ref[...], lnf_b_ref[...], eps)
        o_ref[...] = hn.astype(o_ref.dtype)


def pallas_gpt2_layers(h, p, *, batch, seq, n_head=N_HEAD, eps=LN_EPS):
    # TODO(synk): at real GPT-2 sizes (D>=768, BT in the thousands) the per-layer
    # body must be split into (tm,tn,tk)-tiled matmuls + a flash-attention kernel
    # (grid over B*H / seq); on v7x re-derive tiles against 64 MiB physical /
    # 32 MiB scoped VMEM (each input is double-buffered) and consider fp8 weights.
    BT, D = h.shape
    L = p["w_attn"].shape[0]
    kern = functools.partial(_layers_kernel, batch=batch, seq=seq,
                             n_head=n_head, eps=eps)

    whole2 = lambda l: (0, 0)            # layer-invariant operands (resident across grid)
    layer3 = lambda l: (l, 0, 0)         # per-layer stacked weights

    in_specs = [
        pl.BlockSpec((BT, D), whole2),             # h (read only at l==0)
        pl.BlockSpec((1, D), whole2),              # lnf_g
        pl.BlockSpec((1, D), whole2),              # lnf_b
        pl.BlockSpec((None, 1, D), layer3),        # ln1_g
        pl.BlockSpec((None, 1, D), layer3),        # ln1_b
        pl.BlockSpec((None, D, 3 * D), layer3),    # w_attn
        pl.BlockSpec((None, 1, 3 * D), layer3),    # b_attn
        pl.BlockSpec((None, D, D), layer3),        # w_proj
        pl.BlockSpec((None, 1, D), layer3),        # b_proj
        pl.BlockSpec((None, 1, D), layer3),        # ln2_g
        pl.BlockSpec((None, 1, D), layer3),        # ln2_b
        pl.BlockSpec((None, D, 4 * D), layer3),    # w_fc
        pl.BlockSpec((None, 1, 4 * D), layer3),    # b_fc
        pl.BlockSpec((None, 4 * D, D), layer3),    # w_mproj
        pl.BlockSpec((None, 1, D), layer3),        # b_mproj
    ]

    return pl.pallas_call(
        kern,
        out_shape=jax.ShapeDtypeStruct((BT, D), jnp.bfloat16),
        grid=(L,),
        in_specs=in_specs,
        out_specs=pl.BlockSpec((BT, D), whole2),   # accumulator-resident output
        scratch_shapes=[pltpu.VMEM((BT, D), jnp.float32)],   # f32 residual stream
        compiler_params=pltpu.CompilerParams(dimension_semantics=("arbitrary",)),
    )(h, p["lnf_g"], p["lnf_b"],
      p["ln1_g"], p["ln1_b"], p["w_attn"], p["b_attn"], p["w_proj"], p["b_proj"],
      p["ln2_g"], p["ln2_b"], p["w_fc"], p["b_fc"], p["w_mproj"], p["b_mproj"])


# ---------------- tied LM head kernel (ln_f already applied upstream) ----------------
def _head_kernel(hn_ref, wte_ref, o_ref):
    # logits = hn @ wte.T — contract last dims of both; no wrapper transpose,
    # no bias (decoder is nn.Linear(..., bias=False) tied to wte).
    o_ref[...] = lax.dot_general(
        hn_ref[...], wte_ref[...],
        (((1,), (1,)), ((), ())),
        preferred_element_type=jnp.float32).astype(o_ref.dtype)


def pallas_lm_head(hn, wte, tn=VOCAB):
    # tn=V (one grid step) on single-TC v5e/v6e; on v7x use tn=V//2 so the two
    # TensorCores split the (parallel) vocab axis.
    M, D = hn.shape
    V = wte.shape[0]
    assert V % tn == 0
    return pl.pallas_call(
        _head_kernel,
        out_shape=jax.ShapeDtypeStruct((M, V), jnp.float32),
        grid=(V // tn,),
        in_specs=[
            pl.BlockSpec((M, D), lambda j: (0, 0)),
            pl.BlockSpec((tn, D), lambda j: (j, 0)),     # vocab-tiled weight
        ],
        out_specs=pl.BlockSpec((M, tn), lambda j: (0, j)),   # lane-dense logits tile
        compiler_params=pltpu.CompilerParams(dimension_semantics=("parallel",)),
    )(hn, wte)


# ---------------- parameters (deterministic, matching _init_weights) ----------------
def init_params(key):
    def normal(k, shape):
        # Linear/Embedding weights: N(0, 0.02); stored bf16 for MXU throughput.
        return (0.02 * jax.random.normal(k, shape)).astype(jnp.bfloat16)

    D = N_EMBD
    L = N_LAYER
    keys = jax.random.split(key, 6)
    params = {
        "wte": normal(keys[0], (VOCAB, D)),          # nn.Embedding (tied LM head)
        "wpe": normal(keys[1], (N_POSITIONS, D)),    # nn.Embedding
        "lnf_g": jnp.ones((1, D), jnp.float32),      # LayerNorm weight = 1
        "lnf_b": jnp.zeros((1, D), jnp.float32),     # LayerNorm bias = 0
        # per-layer weights stacked along a leading layer axis for the gridded kernel
        "ln1_g": jnp.ones((L, 1, D), jnp.float32),
        "ln1_b": jnp.zeros((L, 1, D), jnp.float32),
        "w_attn": normal(keys[2], (L, D, 3 * D)),    # Conv1D: [in, out]
        "b_attn": jnp.zeros((L, 1, 3 * D), jnp.float32),
        "w_proj": normal(keys[3], (L, D, D)),
        "b_proj": jnp.zeros((L, 1, D), jnp.float32),
        "ln2_g": jnp.ones((L, 1, D), jnp.float32),
        "ln2_b": jnp.zeros((L, 1, D), jnp.float32),
        "w_fc": normal(keys[4], (L, D, 4 * D)),
        "b_fc": jnp.zeros((L, 1, 4 * D), jnp.float32),
        "w_mproj": normal(keys[5], (L, 4 * D, D)),
        "b_mproj": jnp.zeros((L, 1, D), jnp.float32),
    }
    return params


# ---------------- GPT2Model.forward (past=None, presents unused) ----------------
def gpt2_forward(params, input_ids):
    B, T = input_ids.shape
    D = N_EMBD

    # --- GPT2EmbdStage: token + position embeddings ---
    # TODO(synk): embedding gather kept in plain JAX (not a Pallas hot path).
    pos = jnp.arange(T, dtype=jnp.int32)
    h = (jnp.take(params["wte"], input_ids, axis=0).astype(jnp.float32)
         + jnp.take(params["wpe"], pos, axis=0).astype(jnp.float32)[None])
    h = h.reshape(B * T, D).astype(jnp.bfloat16)    # bf16 at the kernel boundary

    # --- GPT2AttnStage (all blocks) + ln_f: single gridded Pallas kernel ---
    hn = pallas_gpt2_layers(h, params, batch=B, seq=T)

    # --- GPT2HeadStage: decoder tied to wte, no bias ---
    logits = pallas_lm_head(hn, params["wte"])
    return logits.reshape(B, T, VOCAB), None


if __name__ == "__main__":
    key = jax.random.PRNGKey(0)
    pkey, ikey = jax.random.split(key)
    params = init_params(pkey)

    B, T = 2, 16
    input_ids = jax.random.randint(ikey, (B, T), 0, VOCAB, dtype=jnp.int32)

    logits, _ = jax.jit(gpt2_forward)(params, input_ids)
    jax.block_until_ready(logits)

    assert logits.shape == (B, T, VOCAB), logits.shape
    assert bool(jnp.all(jnp.isfinite(logits)))
    print("KERNEL_OK")
</pallas_src>

<mosaic_0001>
module attributes {stable_mosaic.version = 11 : i64} {
  func.func @_layers_kernel(%arg0: i32, %arg1: memref<32x128xbf16, #tpu.memory_space<vmem>>, %arg2: memref<1x128xf32, #tpu.memory_space<vmem>>, %arg3: memref<1x128xf32, #tpu.memory_space<vmem>>, %arg4: memref<1x1x128xf32, #tpu.memory_space<vmem>>, %arg5: memref<1x1x128xf32, #tpu.memory_space<vmem>>, %arg6: memref<1x128x384xbf16, #tpu.memory_space<vmem>>, %arg7: memref<1x1x384xf32, #tpu.memory_space<vmem>>, %arg8: memref<1x128x128xbf16, #tpu.memory_space<vmem>>, %arg9: memref<1x1x128xf32, #tpu.memory_space<vmem>>, %arg10: memref<1x1x128xf32, #tpu.memory_space<vmem>>, %arg11: memref<1x1x128xf32, #tpu.memory_space<vmem>>, %arg12: memref<1x128x512xbf16, #tpu.memory_space<vmem>>, %arg13: memref<1x1x512xf32, #tpu.memory_space<vmem>>, %arg14: memref<1x512x128xbf16, #tpu.memory_space<vmem>>, %arg15: memref<1x1x128xf32, #tpu.memory_space<vmem>>, %arg16: memref<32x128xbf16, #tpu.memory_space<vmem>>, %arg17: memref<32x128xf32, #tpu.memory_space<vmem>>) attributes {dimension_semantics = [#tpu.dimension_semantics<arbitrary>], iteration_bounds = array<i64: 2>, scalar_prefetch = 0 : i64, scratch_operands = 1 : i64, tpu.core_type = #tpu.core_type<tc>, window_params = [{pipeline_mode = #tpu.pipeline_mode<synchronous>, transform_indices = @transform_0, window_bounds = array<i64: 32, 128>}, {pipeline_mode = #tpu.pipeline_mode<synchronous>, transform_indices = @transform_1, window_bounds = array<i64: 1, 128>}, {pipeline_mode = #tpu.pipeline_mode<synchronous>, transform_indices = @transform_2, window_bounds = array<i64: 1, 128>}, {transform_indices = @transform_3, window_bounds = array<i64: 1, 1, 128>}, {transform_indices = @transform_4, window_bounds = array<i64: 1, 1, 128>}, {transform_indices = @transform_5, window_bounds = array<i64: 1, 128, 384>}, {transform_indices = @transform_6, window_bounds = array<i64: 1, 1, 384>}, {transform_indices = @transform_7, window_bounds = array<i64: 1, 128, 128>}, {transform_indices = @transform_8, window_bounds = array<i64: 1, 1, 128>}, {transform_indices = @transform_9, window_bounds = array<i64: 1, 1, 128>}, {transform_indices = @transform_10, window_bounds = array<i64: 1, 1, 128>}, {transform_indices = @transform_11, window_bounds = array<i64: 1, 128, 512>}, {transform_indices = @transform_12, window_bounds = array<i64: 1, 1, 512>}, {transform_indices = @transform_13, window_bounds = array<i64: 1, 512, 128>}, {transform_indices = @transform_14, window_bounds = array<i64: 1, 1, 128>}, {pipeline_mode = #tpu.pipeline_mode<synchronous>, transform_indices = @transform_15, window_bounds = array<i64: 32, 128>}]} {
    %c0_i32 = arith.constant 0 : i32
    %0 = arith.cmpi eq, %arg0, %c0_i32 : i32
    %1 = arith.extui %0 : i1 to i32
    %c0_i32_0 = arith.constant 0 : i32
    %2 = arith.cmpi ne, %1, %c0_i32_0 : i32
    scf.if %2 {
      %c0_64 = arith.constant 0 : index
      %c0_65 = arith.constant 0 : index
      %165 = vector.load %arg1[%c0_64, %c0_65] : memref<32x128xbf16, #tpu.memory_space<vmem>>, vector<32x128xbf16>
      %166 = arith.extf %165 : vector<32x128xbf16> to vector<32x128xf32>
      %c0_66 = arith.constant 0 : index
      %c0_67 = arith.constant 0 : index
      %167 = vector.load %arg17[%c0_66, %c0_67] : memref<32x128xf32, #tpu.memory_space<vmem>>, vector<32x128xf32>
      tpu.vector_store %arg17[%c0_66, %c0_67], %166 {strides = array<i32>} : memref<32x128xf32, #tpu.memory_space<vmem>>, vector<32x128xf32>,
    } else {
    }
    %c0 = arith.constant 0 : index
    %c0_1 = arith.constant 0 : index
    %3 = vector.load %arg17[%c0, %c0_1] : memref<32x128xf32, #tpu.memory_space<vmem>>, vector<32x128xf32>
    %c0_2 = arith.constant 0 : index
    %c0_3 = arith.constant 0 : index
    %c0_4 = arith.constant 0 : index
    %4 = vector.load %arg4[%c0_2, %c0_3, %c0_4] : memref<1x1x128xf32, #tpu.memory_space<vmem>>, vector<1x1x128xf32>
    %5 = vector.shape_cast %4 : vector<1x1x128xf32> to vector<1x128xf32>
    %c0_5 = arith.constant 0 : index
    %c0_6 = arith.constant 0 : index
    %c0_7 = arith.constant 0 : index
    %6 = vector.load %arg5[%c0_5, %c0_6, %c0_7] : memref<1x1x128xf32, #tpu.memory_space<vmem>>, vector<1x1x128xf32>
    %7 = vector.shape_cast %6 : vector<1x1x128xf32> to vector<1x128xf32>
    %cst = arith.constant dense<0.000000e+00> : vector<32xf32>
    %8 = vector.multi_reduction <add>, %3, %cst [1] : vector<32x128xf32> to vector<32xf32>
    %9 = vector.shape_cast %8 : vector<32xf32> to vector<32x1xf32>
    %cst_8 = arith.constant 1.280000e+02 : f32
    %10 = vector.broadcast %cst_8 : f32 to vector<32x1xf32>
    %11 = arith.divf %9, %10 : vector<32x1xf32>
    %12 = vector.broadcast %11 : vector<32x1xf32> to vector<32x128xf32>
    %13 = arith.subf %3, %12 : vector<32x128xf32>
    %14 = arith.mulf %13, %13 : vector<32x128xf32>
    %cst_9 = arith.constant dense<0.000000e+00> : vector<32xf32>
    %15 = vector.multi_reduction <add>, %14, %cst_9 [1] : vector<32x128xf32> to vector<32xf32>
    %16 = vector.shape_cast %15 : vector<32xf32> to vector<32x1xf32>
    %cst_10 = arith.constant 1.280000e+02 : f32
    %17 = vector.broadcast %cst_10 : f32 to vector<32x1xf32>
    %18 = arith.divf %16, %17 : vector<32x1xf32>
    %cst_11 = arith.constant 9.99999974E-6 : f32
    %19 = vector.broadcast %cst_11 : f32 to vector<32x1xf32>
    %20 = arith.addf %18, %19 : vector<32x1xf32>
    %21 = math.rsqrt %20 : vector<32x1xf32>
    %22 = vector.broadcast %21 : vector<32x1xf32> to vector<32x128xf32>
    %23 = arith.mulf %13, %22 : vector<32x128xf32>
    %24 = vector.broadcast %5 : vector<1x128xf32> to vector<32x128xf32>
    %25 = arith.mulf %23, %24 : vector<32x128xf32>
    %26 = vector.broadcast %7 : vector<1x128xf32> to vector<32x128xf32>
    %27 = arith.addf %25, %26 : vector<32x128xf32>
    %28 = arith.truncf %27 : vector<32x128xf32> to vector<32x128xbf16>
    %c0_12 = arith.constant 0 : index
    %c0_13 = arith.constant 0 : index
    %c0_14 = arith.constant 0 : index
    %29 = vector.load %arg6[%c0_12, %c0_13, %c0_14] : memref<1x128x384xbf16, #tpu.memory_space<vmem>>, vector<1x128x384xbf16>
    %30 = vector.shape_cast %29 : vector<1x128x384xbf16> to vector<128x384xbf16>
    %cst_15 = arith.constant dense<0.000000e+00> : vector<32x384xf32>
    %31 = tpu.matmul %28, %30, %cst_15 {dimension_numbers = #tpu.dot_dimension_numbers<[1], [0], [0], [1], [0, 0, 1, 1], [], []>} : vector<32x128xbf16>, vector<128x384xbf16>, vector<32x384xf32> -> vector<32x384xf32>
    %c0_16 = arith.constant 0 : index
    %c0_17 = arith.constant 0 : index
    %c0_18 = arith.constant 0 : index
    %32 = vector.load %arg7[%c0_16, %c0_17, %c0_18] : memref<1x1x384xf32, #tpu.memory_space<vmem>>, vector<1x1x384xf32>
    %33 = vector.shape_cast %32 : vector<1x1x384xf32> to vector<1x384xf32>
    %34 = vector.broadcast %33 : vector<1x384xf32> to vector<32x384xf32>
    %35 = arith.addf %31, %34 : vector<32x384xf32>
    %36 = vector.extract_strided_slice %35 {offsets = [0, 0], sizes = [32, 32], strides = [1, 1]} : vector<32x384xf32> to vector<32x32xf32>
    %37 = vector.shape_cast %36 : vector<32x32xf32> to vector<2x16x32xf32>
    %38 = vector.extract_strided_slice %35 {offsets = [0, 32], sizes = [32, 32], strides = [1, 1]} : vector<32x384xf32> to vector<32x32xf32>
    %39 = vector.shape_cast %38 : vector<32x32xf32> to vector<2x16x32xf32>
    %40 = vector.extract_strided_slice %35 {offsets = [0, 64], sizes = [32, 32], strides = [1, 1]} : vector<32x384xf32> to vector<32x32xf32>
    %41 = vector.shape_cast %40 : vector<32x32xf32> to vector<2x16x32xf32>
    %42 = vector.extract_strided_slice %35 {offsets = [0, 96], sizes = [32, 32], strides = [1, 1]} : vector<32x384xf32> to vector<32x32xf32>
    %43 = vector.shape_cast %42 : vector<32x32xf32> to vector<2x16x32xf32>
    %44 = tpu.concatenate %37, %39, %41, %43 in 0 : vector<2x16x32xf32>, vector<2x16x32xf32>, vector<2x16x32xf32>, vector<2x16x32xf32> -> vector<8x16x32xf32>
    %45 = arith.truncf %44 : vector<8x16x32xf32> to vector<8x16x32xbf16>
    %46 = vector.extract_strided_slice %35 {offsets = [0, 128], sizes = [32, 32], strides = [1, 1]} : vector<32x384xf32> to vector<32x32xf32>
    %47 = vector.shape_cast %46 : vector<32x32xf32> to vector<2x16x32xf32>
    %48 = vector.extract_strided_slice %35 {offsets = [0, 160], sizes = [32, 32], strides = [1, 1]} : vector<32x384xf32> to vector<32x32xf32>
    %49 = vector.shape_cast %48 : vector<32x32xf32> to vector<2x16x32xf32>
    %50 = vector.extract_strided_slice %35 {offsets = [0, 192], sizes = [32, 32], strides = [1, 1]} : vector<32x384xf32> to vector<32x32xf32>
    %51 = vector.shape_cast %50 : vector<32x32xf32> to vector<2x16x32xf32>
    %52 = vector.extract_strided_slice %35 {offsets = [0, 224], sizes = [32, 32], strides = [1, 1]} : vector<32x384xf32> to vector<32x32xf32>
    %53 = vector.shape_cast %52 : vector<32x32xf32> to vector<2x16x32xf32>
    %54 = tpu.concatenate %47, %49, %51, %53 in 0 : vector<2x16x32xf32>, vector<2x16x32xf32>, vector<2x16x32xf32>, vector<2x16x32xf32> -> vector<8x16x32xf32>
    %55 = arith.truncf %54 : vector<8x16x32xf32> to vector<8x16x32xbf16>
    %56 = vector.extract_strided_slice %35 {offsets = [0, 256], sizes = [32, 32], strides = [1, 1]} : vector<32x384xf32> to vector<32x32xf32>
    %57 = vector.shape_cast %56 : vector<32x32xf32> to vector<2x16x32xf32>
    %58 = vector.extract_strided_slice %35 {offsets = [0, 288], sizes = [32, 32], strides = [1, 1]} : vector<32x384xf32> to vector<32x32xf32>
    %59 = vector.shape_cast %58 : vector<32x32xf32> to vector<2x16x32xf32>
    %60 = vector.extract_strided_slice %35 {offsets = [0, 320], sizes = [32, 32], strides = [1, 1]} : vector<32x384xf32> to vector<32x32xf32>
    %61 = vector.shape_cast %60 : vector<32x32xf32> to vector<2x16x32xf32>
    %62 = vector.extract_strided_slice %35 {offsets = [0, 352], sizes = [32, 32], strides = [1, 1]} : vector<32x384xf32> to vector<32x32xf32>
    %63 = vector.shape_cast %62 : vector<32x32xf32> to vector<2x16x32xf32>
    %64 = tpu.concatenate %57, %59, %61, %63 in 0 : vector<2x16x32xf32>, vector<2x16x32xf32>, vector<2x16x32xf32>, vector<2x16x32xf32> -> vector<8x16x32xf32>
    %65 = arith.truncf %64 : vector<8x16x32xf32> to vector<8x16x32xbf16>
    %66 = tpu.iota {dimensions = array<i32: 0>} : vector<16x16xi32>
    %67 = tpu.iota {dimensions = array<i32: 1>} : vector<16x16xi32>
    %68 = arith.cmpi sle, %67, %66 : vector<16x16xi32>
    %69 = vector.shape_cast %68 : vector<16x16xi1> to vector<1x16x16xi1>
    "tpu.trace_start"() <{level = 10 : i32, message = "gtd,gsd->gts"}> : () -> ()
    %cst_19 = arith.constant dense<0.000000e+00> : vector<8x16x16xf32>
    %70 = tpu.matmul %45, %55, %cst_19 {dimension_numbers = #tpu.dot_dimension_numbers<[2], [2], [1], [1], [0, 0, 0, 1, 1, 1], [0], [0]>} : vector<8x16x32xbf16>, vector<8x16x32xbf16>, vector<8x16x16xf32> -> vector<8x16x16xf32>
    "tpu.trace_stop"() : () -> ()
    %cst_20 = arith.constant 0.176776692 : f32
    %71 = vector.broadcast %cst_20 : f32 to vector<8x16x16xf32>
    %72 = arith.mulf %70, %71 : vector<8x16x16xf32>
    %cst_21 = arith.constant -1.000000e+10 : f32
    %73 = vector.shape_cast %69 : vector<1x16x16xi1> to vector<1x16x16xi1>
    %74 = vector.broadcast %73 : vector<1x16x16xi1> to vector<8x16x16xi1>
    %75 = vector.broadcast %cst_21 : f32 to vector<8x16x16xf32>
    %76 = arith.select %74, %72, %75 : vector<8x16x16xi1>, vector<8x16x16xf32>
    %cst_22 = arith.constant dense<0xFF800000> : vector<8x16xf32>
    %77 = vector.multi_reduction <maximumf>, %76, %cst_22 [2] : vector<8x16x16xf32> to vector<8x16xf32>
    %78 = vector.shape_cast %77 : vector<8x16xf32> to vector<8x16x1xf32>
    %79 = vector.broadcast %78 : vector<8x16x1xf32> to vector<8x16x16xf32>
    %80 = arith.subf %76, %79 : vector<8x16x16xf32>
    %81 = math.exp %80 : vector<8x16x16xf32>
    %cst_23 = arith.constant dense<0.000000e+00> : vector<8x16xf32>
    %82 = vector.multi_reduction <add>, %81, %cst_23 [2] : vector<8x16x16xf32> to vector<8x16xf32>
    %83 = vector.shape_cast %82 : vector<8x16xf32> to vector<8x16x1xf32>
    %84 = tpu.reciprocal %83 {approx = true} : vector<8x16x1xf32> -> vector<8x16x1xf32>
    %85 = vector.broadcast %84 : vector<8x16x1xf32> to vector<8x16x16xf32>
    %86 = arith.mulf %81, %85 : vector<8x16x16xf32>
    %87 = arith.truncf %86 : vector<8x16x16xf32> to vector<8x16x16xbf16>
    "tpu.trace_start"() <{level = 10 : i32, message = "gts,gsd->gtd"}> : () -> ()
    %cst_24 = arith.constant dense<0.000000e+00> : vector<8x16x32xf32>
    %88 = tpu.matmul %87, %65, %cst_24 {dimension_numbers = #tpu.dot_dimension_numbers<[2], [1], [1], [2], [0, 0, 0, 1, 1, 2], [0], [0]>} : vector<8x16x16xbf16>, vector<8x16x32xbf16>, vector<8x16x32xf32> -> vector<8x16x32xf32>
    "tpu.trace_stop"() : () -> ()
    %89 = vector.extract_strided_slice %88 {offsets = [0, 0, 0], sizes = [2, 16, 32], strides = [1, 1, 1]} : vector<8x16x32xf32> to vector<2x16x32xf32>
    %90 = vector.shape_cast %89 : vector<2x16x32xf32> to vector<32x32xf32>
    %91 = vector.extract_strided_slice %88 {offsets = [2, 0, 0], sizes = [2, 16, 32], strides = [1, 1, 1]} : vector<8x16x32xf32> to vector<2x16x32xf32>
    %92 = vector.shape_cast %91 : vector<2x16x32xf32> to vector<32x32xf32>
    %93 = vector.extract_strided_slice %88 {offsets = [4, 0, 0], sizes = [2, 16, 32], strides = [1, 1, 1]} : vector<8x16x32xf32> to vector<2x16x32xf32>
    %94 = vector.shape_cast %93 : vector<2x16x32xf32> to vector<32x32xf32>
    %95 = vector.extract_strided_slice %88 {offsets = [6, 0, 0], sizes = [2, 16, 32], strides = [1, 1, 1]} : vector<8x16x32xf32> to vector<2x16x32xf32>
    %96 = vector.shape_cast %95 : vector<2x16x32xf32> to vector<32x32xf32>
    %97 = tpu.concatenate %90, %92, %94, %96 in 1 : vector<32x32xf32>, vector<32x32xf32>, vector<32x32xf32>, vector<32x32xf32> -> vector<32x128xf32>
    %98 = arith.truncf %97 : vector<32x128xf32> to vector<32x128xbf16>
    %c0_25 = arith.constant 0 : index
    %c0_26 = arith.constant 0 : index
    %c0_27 = arith.constant 0 : index
    %99 = vector.load %arg8[%c0_25, %c0_26, %c0_27] : memref<1x128x128xbf16, #tpu.memory_space<vmem>>, vector<1x128x128xbf16>
    %100 = vector.shape_cast %99 : vector<1x128x128xbf16> to vector<128x128xbf16>
    %cst_28 = arith.constant dense<0.000000e+00> : vector<32x128xf32>
    %101 = tpu.matmul %98, %100, %cst_28 {dimension_numbers = #tpu.dot_dimension_numbers<[1], [0], [0], [1], [0, 0, 1, 1], [], []>} : vector<32x128xbf16>, vector<128x128xbf16>, vector<32x128xf32> -> vector<32x128xf32>
    %c0_29 = arith.constant 0 : index
    %c0_30 = arith.constant 0 : index
    %c0_31 = arith.constant 0 : index
    %102 = vector.load %arg9[%c0_29, %c0_30, %c0_31] : memref<1x1x128xf32, #tpu.memory_space<vmem>>, vector<1x1x128xf32>
    %103 = vector.shape_cast %102 : vector<1x1x128xf32> to vector<1x128xf32>
    %104 = vector.broadcast %103 : vector<1x128xf32> to vector<32x128xf32>
    %105 = arith.addf %101, %104 : vector<32x128xf32>
    %106 = arith.addf %3, %105 : vector<32x128xf32>
    %c0_32 = arith.constant 0 : index
    %c0_33 = arith.constant 0 : index
    %c0_34 = arith.constant 0 : index
    %107 = vector.load %arg10[%c0_32, %c0_33, %c0_34] : memref<1x1x128xf32, #tpu.memory_space<vmem>>, vector<1x1x128xf32>
    %108 = vector.shape_cast %107 : vector<1x1x128xf32> to vector<1x128xf32>
    %c0_35 = arith.constant 0 : index
    %c0_36 = arith.constant 0 : index
    %c0_37 = arith.constant 0 : index
    %109 = vector.load %arg11[%c0_35, %c0_36, %c0_37] : memref<1x1x128xf32, #tpu.memory_space<vmem>>, vector<1x1x128xf32>
    %110 = vector.shape_cast %109 : vector<1x1x128xf32> to vector<1x128xf32>
    %cst_38 = arith.constant dense<0.000000e+00> : vector<32xf32>
    %111 = vector.multi_reduction <add>, %106, %cst_38 [1] : vector<32x128xf32> to vector<32xf32>
    %112 = vector.shape_cast %111 : vector<32xf32> to vector<32x1xf32>
    %cst_39 = arith.constant 1.280000e+02 : f32
    %113 = vector.broadcast %cst_39 : f32 to vector<32x1xf32>
    %114 = arith.divf %112, %113 : vector<32x1xf32>
    %115 = vector.broadcast %114 : vector<32x1xf32> to vector<32x128xf32>
    %116 = arith.subf %106, %115 : vector<32x128xf32>
    %117 = arith.mulf %116, %116 : vector<32x128xf32>
    %cst_40 = arith.constant dense<0.000000e+00> : vector<32xf32>
    %118 = vector.multi_reduction <add>, %117, %cst_40 [1] : vector<32x128xf32> to vector<32xf32>
    %119 = vector.shape_cast %118 : vector<32xf32> to vector<32x1xf32>
    %cst_41 = arith.constant 1.280000e+02 : f32
    %120 = vector.broadcast %cst_41 : f32 to vector<32x1xf32>
    %121 = arith.divf %119, %120 : vector<32x1xf32>
    %cst_42 = arith.constant 9.99999974E-6 : f32
    %122 = vector.broadcast %cst_42 : f32 to vector<32x1xf32>
    %123 = arith.addf %121, %122 : vector<32x1xf32>
    %124 = math.rsqrt %123 : vector<32x1xf32>
    %125 = vector.broadcast %124 : vector<32x1xf32> to vector<32x128xf32>
    %126 = arith.mulf %116, %125 : vector<32x128xf32>
    %127 = vector.broadcast %108 : vector<1x128xf32> to vector<32x128xf32>
    %128 = arith.mulf %126, %127 : vector<32x128xf32>
    %129 = vector.broadcast %110 : vector<1x128xf32> to vector<32x128xf32>
    %130 = arith.addf %128, %129 : vector<32x128xf32>
    %131 = arith.truncf %130 : vector<32x128xf32> to vector<32x128xbf16>
    %c0_43 = arith.constant 0 : index
    %c0_44 = arith.constant 0 : index
    %c0_45 = arith.constant 0 : index
    %132 = vector.load %arg12[%c0_43, %c0_44, %c0_45] : memref<1x128x512xbf16, #tpu.memory_space<vmem>>, vector<1x128x512xbf16>
    %133 = vector.shape_cast %132 : vector<1x128x512xbf16> to vector<128x512xbf16>
    %cst_46 = arith.constant dense<0.000000e+00> : vector<32x512xf32>
    %134 = tpu.matmul %131, %133, %cst_46 {dimension_numbers = #tpu.dot_dimension_numbers<[1], [0], [0], [1], [0, 0, 1, 1], [], []>} : vector<32x128xbf16>, vector<128x512xbf16>, vector<32x512xf32> -> vector<32x512xf32>
    %c0_47 = arith.constant 0 : index
    %c0_48 = arith.constant 0 : index
    %c0_49 = arith.constant 0 : index
    %135 = vector.load %arg13[%c0_47, %c0_48, %c0_49] : memref<1x1x512xf32, #tpu.memory_space<vmem>>, vector<1x1x512xf32>
    %136 = vector.shape_cast %135 : vector<1x1x512xf32> to vector<1x512xf32>
    %137 = vector.broadcast %136 : vector<1x512xf32> to vector<32x512xf32>
    %138 = arith.addf %134, %137 : vector<32x512xf32>
    %cst_50 = arith.constant 5.000000e-01 : f32
    %139 = vector.broadcast %cst_50 : f32 to vector<32x512xf32>
    %140 = arith.mulf %139, %138 : vector<32x512xf32>
    %cst_51 = arith.constant 4.471500e-02 : f32
    %141 = vector.broadcast %cst_51 : f32 to vector<32x512xf32>
    %142 = arith.mulf %141, %138 : vector<32x512xf32>
    %143 = arith.mulf %142, %138 : vector<32x512xf32>
    %144 = arith.mulf %143, %138 : vector<32x512xf32>
    %145 = arith.addf %138, %144 : vector<32x512xf32>
    %cst_52 = arith.constant 0.797884583 : f32
    %146 = vector.broadcast %cst_52 : f32 to vector<32x512xf32>
    %147 = arith.mulf %146, %145 : vector<32x512xf32>
    %148 = math.tanh %147 : vector<32x512xf32>
    %cst_53 = arith.constant 1.000000e+00 : f32
    %149 = vector.broadcast %cst_53 : f32 to vector<32x512xf32>
    %150 = arith.addf %149, %148 : vector<32x512xf32>
    %151 = arith.mulf %140, %150 : vector<32x512xf32>
    %152 = arith.truncf %151 : vector<32x512xf32> to vector<32x512xbf16>
    %c0_54 = arith.constant 0 : index
    %c0_55 = arith.constant 0 : index
    %c0_56 = arith.constant 0 : index
    %153 = vector.load %arg14[%c0_54, %c0_55, %c0_56] : memref<1x512x128xbf16, #tpu.memory_space<vmem>>, vector<1x512x128xbf16>
    %154 = vector.shape_cast %153 : vector<1x512x128xbf16> to vector<512x128xbf16>
    %cst_57 = arith.constant dense<0.000000e+00> : vector<32x128xf32>
    %155 = tpu.matmul %152, %154, %cst_57 {dimension_numbers = #tpu.dot_dimension_numbers<[1], [0], [0], [1], [0, 0, 1, 1], [], []>} : vector<32x512xbf16>, vector<512x128xbf16>, vector<32x128xf32> -> vector<32x128xf32>
    %c0_58 = arith.constant 0 : index
    %c0_59 = arith.constant 0 : index
    %c0_60 = arith.constant 0 : index
    %156 = vector.load %arg15[%c0_58, %c0_59, %c0_60] : memref<1x1x128xf32, #tpu.memory_space<vmem>>, vector<1x1x128xf32>
    %157 = vector.shape_cast %156 : vector<1x1x128xf32> to vector<1x128xf32>
    %158 = vector.broadcast %157 : vector<1x128xf32> to vector<32x128xf32>
    %159 = arith.addf %155, %158 : vector<32x128xf32>
    %160 = arith.addf %106, %159 : vector<32x128xf32>
    %c0_61 = arith.constant 0 : index
    %c0_62 = arith.constant 0 : index
    %161 = vector.load %arg17[%c0_61, %c0_62] : memref<32x128xf32, #tpu.memory_space<vmem>>, vector<32x128xf32>
    tpu.vector_store %arg17[%c0_61, %c0_62], %160 {strides = array<i32>} : memref<32x128xf32, #tpu.memory_space<vmem>>, vector<32x128xf32>,
    %c1_i32 = arith.constant 1 : i32
    %162 = arith.cmpi eq, %arg0, %c1_i32 : i32
    %163 = arith.extui %162 : i1 to i32
    %c0_i32_63 = arith.constant 0 : i32
    %164 = arith.cmpi ne, %163, %c0_i32_63 : i32
    scf.if %164 {
      %c0_64 = arith.constant 0 : index
      %c0_65 = arith.constant 0 : index
      %165 = vector.load %arg2[%c0_64, %c0_65] : memref<1x128xf32, #tpu.memory_space<vmem>>, vector<1x128xf32>
      %c0_66 = arith.constant 0 : index
      %c0_67 = arith.constant 0 : index
      %166 = vector.load %arg3[%c0_66, %c0_67] : memref<1x128xf32, #tpu.memory_space<vmem>>, vector<1x128xf32>
      %cst_68 = arith.constant dense<0.000000e+00> : vector<32xf32>
      %167 = vector.multi_reduction <add>, %160, %cst_68 [1] : vector<32x128xf32> to vector<32xf32>
      %168 = vector.shape_cast %167 : vector<32xf32> to vector<32x1xf32>
      %cst_69 = arith.constant 1.280000e+02 : f32
      %169 = vector.broadcast %cst_69 : f32 to vector<32x1xf32>
      %170 = arith.divf %168, %169 : vector<32x1xf32>
      %171 = vector.broadcast %170 : vector<32x1xf32> to vector<32x128xf32>
      %172 = arith.subf %160, %171 : vector<32x128xf32>
      %173 = arith.mulf %172, %172 : vector<32x128xf32>
      %cst_70 = arith.constant dense<0.000000e+00> : vector<32xf32>
      %174 = vector.multi_reduction <add>, %173, %cst_70 [1] : vector<32x128xf32> to vector<32xf32>
      %175 = vector.shape_cast %174 : vector<32xf32> to vector<32x1xf32>
      %cst_71 = arith.constant 1.280000e+02 : f32
      %176 = vector.broadcast %cst_71 : f32 to vector<32x1xf32>
      %177 = arith.divf %175, %176 : vector<32x1xf32>
      %cst_72 = arith.constant 9.99999974E-6 : f32
      %178 = vector.broadcast %cst_72 : f32 to vector<32x1xf32>
      %179 = arith.addf %177, %178 : vector<32x1xf32>
      %180 = math.rsqrt %179 : vector<32x1xf32>
      %181 = vector.broadcast %180 : vector<32x1xf32> to vector<32x128xf32>
      %182 = arith.mulf %172, %181 : vector<32x128xf32>
      %183 = vector.broadcast %165 : vector<1x128xf32> to vector<32x128xf32>
      %184 = arith.mulf %182, %183 : vector<32x128xf32>
      %185 = vector.broadcast %166 : vector<1x128xf32> to vector<32x128xf32>
      %186 = arith.addf %184, %185 : vector<32x128xf32>
      %187 = arith.truncf %186 : vector<32x128xf32> to vector<32x128xbf16>
      %c0_73 = arith.constant 0 : index
      %c0_74 = arith.constant 0 : index
      %188 = vector.load %arg16[%c0_73, %c0_74] : memref<32x128xbf16, #tpu.memory_space<vmem>>, vector<32x128xbf16>
      tpu.vector_store %arg16[%c0_73, %c0_74], %187 {strides = array<i32>} : memref<32x128xbf16, #tpu.memory_space<vmem>>, vector<32x128xbf16>,
    } else {
    }
    return
  }
  func.func @transform_0(%arg0: i32) -> (i32, i32) {
    %c0_i32 = arith.constant 0 : i32
    %c0_i32_0 = arith.constant 0 : i32
    %c0_i32_1 = arith.constant 0 : i32
    return %c0_i32, %c0_i32_0 : i32, i32
  }
  func.func @transform_1(%arg0: i32) -> (i32, i32) {
    %c0_i32 = arith.constant 0 : i32
    %c0_i32_0 = arith.constant 0 : i32
    %c0_i32_1 = arith.constant 0 : i32
    return %c0_i32, %c0_i32_0 : i32, i32
  }
  func.func @transform_2(%arg0: i32) -> (i32, i32) {
    %c0_i32 = arith.constant 0 : i32
    %c0_i32_0 = arith.constant 0 : i32
    %c0_i32_1 = arith.constant 0 : i32
    return %c0_i32, %c0_i32_0 : i32, i32
  }
  func.func @transform_3(%arg0: i32) -> (i32, i32, i32) {
    %c0_i32 = arith.constant 0 : i32
    %c0_i32_0 = arith.constant 0 : i32
    %c0_i32_1 = arith.constant 0 : i32
    return %arg0, %c0_i32, %c0_i32_0 : i32, i32, i32
  }
  func.func @transform_4(%arg0: i32) -> (i32, i32, i32) {
    %c0_i32 = arith.constant 0 : i32
    %c0_i32_0 = arith.constant 0 : i32
    %c0_i32_1 = arith.constant 0 : i32
    return %arg0, %c0_i32, %c0_i32_0 : i32, i32, i32
  }
  func.func @transform_5(%arg0: i32) -> (i32, i32, i32) {
    %c0_i32 = arith.constant 0 : i32
    %c0_i32_0 = arith.constant 0 : i32
    %c0_i32_1 = arith.constant 0 : i32
    return %arg0, %c0_i32, %c0_i32_0 : i32, i32, i32
  }
  func.func @transform_6(%arg0: i32) -> (i32, i32, i32) {
    %c0_i32 = arith.constant 0 : i32
    %c0_i32_0 = arith.constant 0 : i32
    %c0_i32_1 = arith.constant 0 : i32
    return %arg0, %c0_i32, %c0_i32_0 : i32, i32, i32
  }
  func.func @transform_7(%arg0: i32) -> (i32, i32, i32) {
    %c0_i32 = arith.constant 0 : i32
    %c0_i32_0 = arith.constant 0 : i32
    %c0_i32_1 = arith.constant 0 : i32
    return %arg0, %c0_i32, %c0_i32_0 : i32, i32, i32
  }
  func.func @transform_8(%arg0: i32) -> (i32, i32, i32) {
    %c0_i32 = arith.constant 0 : i32
    %c0_i32_0 = arith.constant 0 : i32
    %c0_i32_1 = arith.constant 0 : i32
    return %arg0, %c0_i32, %c0_i32_0 : i32, i32, i32
  }
  func.func @transform_9(%arg0: i32) -> (i32, i32, i32) {
    %c0_i32 = arith.constant 0 : i32
    %c0_i32_0 = arith.constant 0 : i32
    %c0_i32_1 = arith.constant 0 : i32
    return %arg0, %c0_i32, %c0_i32_0 : i32, i32, i32
  }
  func.func @transform_10(%arg0: i32) -> (i32, i32, i32) {
    %c0_i32 = arith.constant 0 : i32
    %c0_i32_0 = arith.constant 0 : i32
    %c0_i32_1 = arith.constant 0 : i32
    return %arg0, %c0_i32, %c0_i32_0 : i32, i32, i32
  }
  func.func @transform_11(%arg0: i32) -> (i32, i32, i32) {
    %c0_i32 = arith.constant 0 : i32
    %c0_i32_0 = arith.constant 0 : i32
    %c0_i32_1 = arith.constant 0 : i32
    return %arg0, %c0_i32, %c0_i32_0 : i32, i32, i32
  }
  func.func @transform_12(%arg0: i32) -> (i32, i32, i32) {
    %c0_i32 = arith.constant 0 : i32
    %c0_i32_0 = arith.constant 0 : i32
    %c0_i32_1 = arith.constant 0 : i32
    return %arg0, %c0_i32, %c0_i32_0 : i32, i32, i32
  }
  func.func @transform_13(%arg0: i32) -> (i32, i32, i32) {
    %c0_i32 = arith.constant 0 : i32
    %c0_i32_0 = arith.constant 0 : i32
    %c0_i32_1 = arith.constant 0 : i32
    return %arg0, %c0_i32, %c0_i32_0 : i32, i32, i32
  }
  func.func @transform_14(%arg0: i32) -> (i32, i32, i32) {
    %c0_i32 = arith.constant 0 : i32
    %c0_i32_0 = arith.constant 0 : i32
    %c0_i32_1 = arith.constant 0 : i32
    return %arg0, %c0_i32, %c0_i32_0 : i32, i32, i32
  }
  func.func @transform_15(%arg0: i32) -> (i32, i32) {
    %c0_i32 = arith.constant 0 : i32
    %c0_i32_0 = arith.constant 0 : i32
    %c0_i32_1 = arith.constant 0 : i32
    return %c0_i32, %c0_i32_0 : i32, i32
  }
}

module attributes {stable_mosaic.version = 11 : i64} {
  func.func @_head_kernel(%arg0: i32, %arg1: memref<32x128xbf16, #tpu.memory_space<vmem>>, %arg2: memref<256x128xbf16, #tpu.memory_space<vmem>>, %arg3: memref<32x256xf32, #tpu.memory_space<vmem>>) attributes {dimension_semantics = [#tpu.dimension_semantics<parallel>], iteration_bounds = array<i64: 1>, scalar_prefetch = 0 : i64, scratch_operands = 0 : i64, tpu.core_type = #tpu.core_type<tc>, window_params = [{pipeline_mode = #tpu.pipeline_mode<synchronous>, transform_indices = @transform_0, window_bounds = array<i64: 32, 128>}, {transform_indices = @transform_1, window_bounds = array<i64: 256, 128>}, {transform_indices = @transform_2, window_bounds = array<i64: 32, 256>}]} {
    %c0 = arith.constant 0 : index
    %c0_0 = arith.constant 0 : index
    %0 = vector.load %arg1[%c0, %c0_0] : memref<32x128xbf16, #tpu.memory_space<vmem>>, vector<32x128xbf16>
    %c0_1 = arith.constant 0 : index
    %c0_2 = arith.constant 0 : index
    %1 = vector.load %arg2[%c0_1, %c0_2] : memref<256x128xbf16, #tpu.memory_space<vmem>>, vector<256x128xbf16>
    %cst = arith.constant dense<0.000000e+00> : vector<32x256xf32>
    %2 = tpu.matmul %0, %1, %cst {dimension_numbers = #tpu.dot_dimension_numbers<[1], [1], [0], [0], [0, 0, 1, 0], [], []>} : vector<32x128xbf16>, vector<256x128xbf16>, vector<32x256xf32> -> vector<32x256xf32>
    %c0_3 = arith.constant 0 : index
    %c0_4 = arith.constant 0 : index
    %3 = vector.load %arg3[%c0_3, %c0_4] : memref<32x256xf32, #tpu.memory_space<vmem>>, vector<32x256xf32>
    tpu.vector_store %arg3[%c0_3, %c0_4], %2 {strides = array<i32>} : memref<32x256xf32, #tpu.memory_space<vmem>>, vector<32x256xf32>,
    return
  }
  func.func @transform_0(%arg0: i32) -> (i32, i32) {
    %c0_i32 = arith.constant 0 : i32
    %c0_i32_0 = arith.constant 0 : i32
    %c0_i32_1 = arith.constant 0 : i32
    return %c0_i32, %c0_i32_0 : i32, i32
  }
  func.func @transform_1(%arg0: i32) -> (i32, i32) {
    %c0_i32 = arith.constant 0 : i32
    %c0_i32_0 = arith.constant 0 : i32
    return %arg0, %c0_i32 : i32, i32
  }
  func.func @transform_2(%arg0: i32) -> (i32, i32) {
    %c0_i32 = arith.constant 0 : i32
    %c0_i32_0 = arith.constant 0 : i32
    return %c0_i32, %arg0 : i32, i32
  }
}

</mosaic_0001>

<bundles_post_ra>
// kernel: gpt2_forward.3
= control target key start
LH: loop header
LB: loop body
LE: loop exit
PB: predicated region body
PF: predicated region fallthrough
CT: control target
= control target key end

     0   :  { %s417_s0 = inlined_call_operand.vmem [shape: bf16[32,128], index: 0, kind: input, shape index: {}]   ;;  %s418_s1 = inlined_call_operand.vmem [shape: bf16[256,128], index: 1, kind: input, shape index: {}]   ;;  %s419_s2 = inlined_call_operand.hbm [shape: f32[32,256], index: 2, kind: output, shape index: {}]  }
   0x1   :  { %v291_v0 = vld [vmem:[%s418_s1 + $0x40] sm:$0xff]   ;;  %v293_v2 = vld [vmem:[%s418_s1 + $0x48] sm:$0xff]   ;;  %v295_v4 = vld [vmem:[%s418_s1 + $0x50] sm:$0xff]  }
   0x2   :  { %v292_v1 = vld [vmem:[%s418_s1] sm:$0xff]   ;;  %252 = vmatprep.subr.bf16.mxu0 %v291_v0  ;;  %272 = vmatprep.subr.bf16.mxu1 %v291_v0  ;;  %v294_v3 = vld [vmem:[%s418_s1 + $0x8] sm:$0xff]   ;;  %v296_v5 = vld [vmem:[%s418_s1 + $0x10] sm:$0xff]  }
   0x3   :  { %253 = vmatpush3.bf16.xpose.msra.mxu0 %v292_v1  ;;  %280 = vmatpush3.bf16.xpose.msra.mxu1 %v292_v1  ;;  %v297_v6 = vld [vmem:[%s418_s1 + $0x58] sm:$0xff]   ;;  %v307_v7 = vld [vmem:[%s417_s0] sm:$0xff]   ;;  %v308_v8 = vld [vmem:[%s417_s0 + $0x8] sm:$0xff]  }
   0x4   :  { %254 = vmatprep.subr.bf16.mxu0 %v293_v2  ;;  %273 = vmatprep.subr.bf16.mxu1 %v293_v2 }
   0x5   :  { %268 = vmatprep.mubr.bf16.mxu0 %v307_v7 }
   0xb   :  { %255 = vmatpush3.bf16.xpose.msra.mxu0 %v294_v3  ;;  %281 = vmatpush3.bf16.xpose.msra.mxu1 %v294_v3 }
   0xc   :  { %256 = vmatprep.subr.bf16.mxu0 %v295_v4  ;;  %274 = vmatprep.subr.bf16.mxu1 %v295_v4 }
   0xd   :  { %7 = vsyncpa [#allocation3], 0  ;;  %270 = vmatprep.mubr.bf16.mxu1 %v308_v8  ;;  %v298_v9 = vld [vmem:[%s418_s1 + $0x18] sm:$0xff]   ;;  %v299_v10 = vld [vmem:[%s418_s1 + $0x60] sm:$0xff]   ;;  %s333_s16 = smov [#allocation2]  }
   0xe   :  { %v300_v11 = vld [vmem:[%s418_s1 + $0x20] sm:$0xff]   ;;  %v301_v12 = vld [vmem:[%s418_s1 + $0x68] sm:$0xff]   ;;  %v303_v14 = vld [vmem:[%s418_s1 + $0x70] sm:$0xff]   ;;  %s223_s17 = sshll.u32 %s333_s16, 4  ;;  %s224_s17 = int_to_ptr.vmem [resolvable:$true] %s223_s17 }
   0xf   :  { %v302_v13 = vld [vmem:[%s418_s1 + $0x28] sm:$0xff]   ;;  %v304_v15 = vld [vmem:[%s418_s1 + $0x30] sm:$0xff]   ;;  %v305_v16 = vld [vmem:[%s418_s1 + $0x78] sm:$0xff]   ;;  %p314_p1 = scmp.lt.s32.totalorder %s224_s17, %s224_s17 }
  0x10   :  { %v306_v17 = vld [vmem:[%s418_s1 + $0x38] sm:$0xff]   ;;  %s309_s1 = scalar_lea.vmem %s224_s17, 1024 }
  0x11   :  { %p310_p0 = scmp.ne.s32.totalorder %s224_s17, %s309_s1  ;;  %p315_p2 = scmp.lt.s32.totalorder %s309_s1, %s309_s1 }
  0x13   :  { %257 = vmatpush3.bf16.xpose.msra.mxu0 %v296_v5  ;;  %282 = vmatpush3.bf16.xpose.msra.mxu1 %v296_v5  ;;  %p316_p3 = por %p315_p2, %p314_p1 }
  0x14   :  { %258 = vmatprep.subr.bf16.mxu0 %v297_v6  ;;  %275 = vmatprep.subr.bf16.mxu1 %v297_v6 }
  0x15   :  { %p317_p4 = pnand %p316_p3, %p310_p0 }
  0x1b   :  { %259 = vmatpush3.bf16.xpose.msra.mxu0 %v298_v9  ;;  %283 = vmatpush3.bf16.xpose.msra.mxu1 %v298_v9 }
  0x1c   :  { %260 = vmatprep.subr.bf16.mxu0 %v299_v10  ;;  %276 = vmatprep.subr.bf16.mxu1 %v299_v10 }
  0x23   :  { %261 = vmatpush3.bf16.xpose.msra.mxu0 %v300_v11  ;;  %284 = vmatpush3.bf16.xpose.msra.mxu1 %v300_v11 }
  0x24   :  { %262 = vmatprep.subr.bf16.mxu0 %v301_v12  ;;  %277 = vmatprep.subr.bf16.mxu1 %v301_v12 }
  0x2b   :  { %263 = vmatpush3.bf16.xpose.msra.mxu0 %v302_v13  ;;  %285 = vmatpush3.bf16.xpose.msra.mxu1 %v302_v13 }
  0x2c   :  { %264 = vmatprep.subr.bf16.mxu0 %v303_v14  ;;  %278 = vmatprep.subr.bf16.mxu1 %v303_v14 }
  0x33   :  { %265 = vmatpush3.bf16.xpose.msra.mxu0 %v304_v15  ;;  %286 = vmatpush3.bf16.xpose.msra.mxu1 %v304_v15 }
  0x34   :  { %266 = vmatprep.subr.bf16.mxu0 %v305_v16  ;;  %279 = vmatprep.subr.bf16.mxu1 %v305_v16 }
  0x3b   :  { %267 = vmatpush3.bf16.xpose.msra.mxu0 %v306_v17  ;;  %287 = vmatpush3.bf16.xpose.msra.mxu1 %v306_v17 }
  0x42   :  { %269 = vmatmul.mubr.bf16.vlgmr.msra.gmra.mrb[0].mxu0 %v307_v7  ;;  %271 = vmatmul.mubr.bf16.vlgmr.msra.gmra.mrb[0].mxu1 %v308_v8 }
 0x115   :  { %v191_v18 = vpop.f32.mrb[0].mxu0  ;;  %v201_v19 = vpop.f32.mrb[0].mxu1 }
 0x116   :  { %210 = vst [vmem:[#allocation2] sm:$0xff] %v191_v18  ;;  %214 = vst [vmem:[#allocation2 + $0x20] sm:$0xff] %v201_v19  ;;  %v193_v20 = vpop.f32.mrb[1].mxu0  ;;  %v203_v21 = vpop.f32.mrb[1].mxu1 }
 0x117   :  { %211 = vst [vmem:[#allocation2 + $0x8] sm:$0xff] %v193_v20  ;;  %215 = vst [vmem:[#allocation2 + $0x28] sm:$0xff] %v203_v21  ;;  %v195_v22 = vpop.f32.mrb[2].mxu0  ;;  %v205_v23 = vpop.f32.mrb[2].mxu1 }
 0x118   :  { %212 = vst [vmem:[#allocation2 + $0x10] sm:$0xff] %v195_v22  ;;  %216 = vst [vmem:[#allocation2 + $0x30] sm:$0xff] %v205_v23  ;;  %v197_v24 = vpop.f32.mrb[3].mxu0  ;;  %v207_v25 = vpop.f32.mrb[3].mxu1 }
 0x119   :  { %213 = vst [vmem:[#allocation2 + $0x18] sm:$0xff] %v197_v24  ;;  %217 = vst [vmem:[#allocation2 + $0x38] sm:$0xff] %v207_v25 }
 0x11a   :  { %320 = shalt.err (!%p317_p4)
}
 0x11b   :  { %s321_s20 = scalar_lea.hbm %s419_s2, 1024 }
 0x11c   :  { %p322_p5 = scmp.ne.s32.totalorder %s419_s2, %s321_s20  ;;  %p325_p6 = scmp.lt.u32.totalorder %s321_s20, %s419_s2 }
 0x11e   :  { %p327_p7 = pnand %p325_p6, %p322_p5 }
 0x120   :  { %330 = shalt.err (!%p327_p7)
}
 0x121   :  { %s334_s25 = smov 256   ;;  %s335_s26 = smov 16  }
 0x122   :  { %229 = dma.vmem_to_hbm [thread:$0]  %s224_s17, 1024, %s419_s2, [#allocation3], %s334_s25, %s334_s25, %s335_s26  }
 0x123   :  { %331 = dma.done.wait [#allocation3], 1024  }
 0x124   :  { %332 = vsyncadd [#allocation3], 4294966272 }
 0x125   :  { %233 = vsyncpa [#allocation3], 1 }

// kernel: gpt2_forward.2
= control target key start
LH: loop header
LB: loop body
LE: loop exit
PB: predicated region body
PF: predicated region fallthrough
CT: control target
= control target key end

     0   :  { %s5570_s0 = inlined_call_operand.vmem [shape: bf16[32,128], index: 0, kind: input, shape index: {}]   ;;  %s5571_s1 = inlined_call_operand.vmem [shape: f32[1,128], index: 1, kind: input, shape index: {}]   ;;  %s5572_s2 = inlined_call_operand.vmem [shape: f32[1,128], index: 2, kind: input, shape index: {}]   ;;  %s5573_s3 = inlined_call_operand.vmem [shape: f32[2,1,128], index: 3, kind: input, shape index: {}]   ;;  %s5574_s4 = inlined_call_operand.vmem [shape: f32[2,1,128], index: 4, kind: input, shape index: {}]   ;;  %s5575_s5 = inlined_call_operand.hbm [shape: bf16[2,128,384], index: 5, kind: input, shape index: {}]   ;;  %s5576_s6 = inlined_call_operand.vmem [shape: f32[2,1,384], index: 6, kind: input, shape index: {}]   ;;  %s5577_s7 = inlined_call_operand.vmem [shape: bf16[2,128,128], index: 7, kind: input, shape index: {}]   ;;  %s5578_s8 = inlined_call_operand.vmem [shape: f32[2,1,128], index: 8, kind: input, shape index: {}]   ;;  %s5579_s9 = inlined_call_operand.vmem [shape: f32[2,1,128], index: 9, kind: input, shape index: {}]   ;;  %s5580_s10 = inlined_call_operand.vmem [shape: f32[2,1,128], index: 10, kind: input, shape index: {}]   ;;  %s5581_s11 = inlined_call_operand.hbm [shape: bf16[2,128,512], index: 11, kind: input, shape index: {}]   ;;  %s5582_s12 = inlined_call_operand.vmem [shape: f32[2,1,512], index: 12, kind: input, shape index: {}]   ;;  %s5583_s13 = inlined_call_operand.hbm [shape: bf16[2,512,128], index: 13, kind: input, shape index: {}]   ;;  %s5584_s14 = inlined_call_operand.vmem [shape: f32[2,1,128], index: 14, kind: input, shape index: {}]   ;;  %s5585_s15 = inlined_call_operand.vmem [shape: bf16[32,128], index: 15, kind: output, shape index: {}]  }
   0x1   :  { %5594 = sst [smem:[#allocation13_spill]] %s5570_s0 }
   0x2   :  { %5595 = sst [smem:[#allocation14_spill]] %s5571_s1 }
   0x3   :  { %5596 = sst [smem:[#allocation15_spill]] %s5572_s2 }
   0x4   :  { %5597 = sst [smem:[#allocation16_spill]] %s5575_s5 }
   0x5   :  { %5598 = sst [smem:[#allocation17_spill]] %s5577_s7 }
   0x6   :  { %5599 = sst [smem:[#allocation18_spill]] %s5581_s11 }
   0x7   :  { %5600 = sst [smem:[#allocation19_spill]] %s5583_s13 }
   0x8   :  { %5601 = sst [smem:[#allocation20_spill]] %s5584_s14 }
   0x9   :  { %5602 = sst [smem:[#allocation21_spill]] %s5585_s15 }
   0xa   :  { %20 = vsyncpa [#allocation4], 0 }
   0xb   :  { %22 = vsyncpa [#allocation4 + $0x1], 0 }
   0xc   :  { %23 = vsyncpa [#allocation6], 0 }
   0xd   :  { %25 = vsyncpa [#allocation6 + $0x1], 0  ;;  %s4613_s18 = smov 0   ;;  %s4615_s19 = smov 0  }
   0xe   :  { %s4617_s20 = smov 0   ;;  %s4619_s21 = smov 0  }
   0xf LB: > { %5603 = sst [smem:[#allocation10_spill]] %s4512_s20  ;;  %s4632_s22 = sadd.s32 4294967295, %s4516_s21   ;;  %s4516_s21 = sphi %s4619_s21, %s5634_s21   ;;  %s4512_s20 = sphi %s4617_s20, %s5636_s20   ;;  %s4508_s19 = sphi %s4615_s19, %s5638_s19   ;;  %s4504_s18 = sphi %s4613_s18, %s5637_s18  }
  0x10   : > { %s4635_s23 = sadd.s32 1, %s4516_s21   ;;  %s153_s25 = sadd.s32 1, %s4512_s20 }
  0x11   : > { %5604 = sst [smem:[#allocation11_spill]] %s4635_s23  ;;  %s150_s24 = ssub.s32 %s4516_s21, %s4635_s23 }
  0x12   : > { %p151_p0 = scmp.eq.s32.totalorder %s150_s24, 0  ;;  %p160_p1 = scmp.ne.s32.totalorder %s4512_s20, %s4508_s19 }
  0x13   : > { %p161_p2 = scmp.eq.s32.totalorder %s4516_s21, 0  ;;  %p166_p3 = scmp.ne.s32.totalorder %s4508_s19, %s4504_s18 }
  0x14   : > { %s4645_s26 = scalar_select %p151_p0, %s4512_s20, %s153_s25  }
  0x15   : > { %p162_p4 = por %p161_p2, %p160_p1  ;;  %p167_p5 = scmp.eq.s32.totalorder %s4632_s22, 0 }
  0x16   : > { %5605 = sst [smem:[#allocation12_spill]] %s4645_s26  ;;  %p3979_p6 = scmp.lt.s32.totalorder %s4516_s21, 2 }
  0x17   : > { %p4649_p7 = por %p167_p5, %p166_p3  ;;  %s4654_s28 = sand.u32 1, %s4512_s20  }
  0x18   : > { %p4656_p8 = pnand %p3979_p6, %p162_p4  ;;  %s520_s30 = sand.u32 1, %s4516_s21  }
  0x19   : > { %s5606_s27 = scalar_select %p4649_p7, 1, 0 }
  0x1a   : > { %s5590_s16 = sshll.u32 %s4654_s28, 8  ;;  %s5591_s17 = sshll.u32 %s4516_s21, 12 }
  0x1b   : > { %s524_s18 = scalar_lea.vmem [#allocation5], %s5590_s16  ;;  %s5608_s11 = sld [smem:[#allocation18_spill]] }
  0x1c   : > { %s531_s24 = sshll.u32 %s524_s18, 4  ;;  %s4674_s20 = scalar_lea.sflag [#allocation6], %s520_s30  ;;  %s4672_s24 = int_to_ptr.vmem [resolvable:$true] %s531_s24 }
  0x1d   : > { %p4680_p10 = pneg %p4656_p8 }
  0x21   : > { %s4670_s23 = scalar_lea.hbm %s5608_s11, %s5591_s17  ;;  %s4393_s25 = scalar_lea.hbm %s5608_s11, 8192 }
  0x22   : > { %s4388_s15 = scalar_lea.hbm %s4670_s23, 4096  ;;  %p4394_p13 = scmp.lt.u32.totalorder %s4670_s23, %s5608_s11 }
  0x23   : > { %p4389_p9 = scmp.ne.s32.totalorder %s4670_s23, %s4388_s15  ;;  %p4395_p0 = scmp.lt.u32.totalorder %s4393_s25, %s4388_s15 }
  0x24   : > { %p4397_p2 = scmp.lt.u32.totalorder %s4388_s15, %s4670_s23 }
  0x25   : > { %p4391_p11 = pnand %p4680_p10, %p4389_p9  ;;  %p4396_p1 = por %p4395_p0, %p4394_p13 }
  0x27   : > { %p4392_p12 = pneg %p4391_p11  ;;  %p4398_p3 = por %p4397_p2, %p4396_p1 }
  0x29   : > { %p4399_p4 = pnand %p4398_p3, %p4392_p12 }
  0x2b   : > { %4402 = shalt.err (!%p4399_p4)
}
  0x2c   : > { %s4403_s30 = scalar_lea.vmem %s4672_s24, 4096  ;;  %s4518_s26 = smov [#allocation5]  }
  0x2d   : > { %p4404_p5 = scmp.ne.s32.totalorder %s4672_s24, %s4403_s30  ;;  %s4408_s18 = sshll.u32 %s4518_s26, 4  ;;  %s4409_s18 = int_to_ptr.vmem [resolvable:$false] %s4408_s18 }
  0x2e   : > { %s4410_s2 = scalar_lea.vmem %s4409_s18, 8192  ;;  %p4411_p11 = scmp.lt.s32.totalorder %s4672_s24, %s4409_s18 }
  0x2f   : > { %p4406_p6 = pnand %p4404_p5, %p4680_p10  ;;  %p4412_p7 = scmp.lt.s32.totalorder %s4410_s2, %s4403_s30 }
  0x31   : > { %p4407_p9 = pneg %p4406_p6  ;;  %p4413_p13 = por %p4412_p7, %p4411_p11 }
  0x33   : > { %p4414_p0 = pnand %p4413_p13, %p4407_p9 }
  0x35   : > { %4417 = shalt.err (!%p4414_p0)
}
  0x36   : > { %s4519_s15 = smov 256   ;;  %s4520_s17 = smov 16  }
  0x37   : > { %3975 = dma.hbm_to_vmem [thread:$0]  (!%p4656_p8), %s4670_s23, 4096, %s4672_s24, %s4674_s20, %s4519_s15, %s4519_s15, %s4520_s17  }
  0x38   : > { %s5610_s25 = sshll.u32 %s4516_s21, 12  ;;  %s5611_s13 = sld [smem:[#allocation19_spill]] }
  0x39   : > { %s5612_s2 = sshll.u32 %s4654_s28, 8  ;;  %p3554_p7 = scmp.ge.s32.totalorder %s4516_s21, 1 }
  0x3a   : > { %s552_s11 = scalar_lea.vmem [#allocation7], %s5612_s2  ;;  %p573_p12 = scmp.lt.s32.totalorder %s4516_s21, 3 }
  0x3b   : > { %s559_s1 = sshll.u32 %s552_s11, 4  ;;  %s3959_s0 = smul.u32 192, %s4654_s28  ;;  %s4714_s1 = int_to_ptr.vmem [resolvable:$true] %s559_s1 }
  0x3c   : > { %p4718_p1 = pnand %p3554_p7, %p573_p12  ;;  %s3960_s23 = smul.u32 3072, %s4516_s21 }
  0x3d   : > { %s5614_s5 = sld [smem:[#allocation16_spill]]  ;;  %s470_s11 = scalar_lea.vmem [#allocation3], %s3959_s0 }
  0x3e   : > { %s4709_s18 = scalar_lea.hbm %s5611_s13, %s5610_s25  ;;  %s477_s25 = sshll.u32 %s470_s11, 4  ;;  %s4728_s25 = int_to_ptr.vmem [resolvable:$true] %s477_s25 }
  0x3f   : > { %s5613_s14 = scalar_select %p4718_p1, 1, 0 }
  0x40   : > { %s467_s30 = scalar_lea.sflag [#allocation4], %s4654_s28 }
  0x43   : > { %s4726_s17 = scalar_lea.hbm %s5614_s5, %s3960_s23  ;;  %s4423_s24 = scalar_lea.hbm %s5614_s5, 6144 }
  0x44   : > { %s4418_s26 = scalar_lea.hbm %s4726_s17, 3072  ;;  %p4424_p5 = scmp.lt.u32.totalorder %s4726_s17, %s5614_s5 }
  0x45   : > { %p4419_p2 = scmp.ne.s32.totalorder %s4726_s17, %s4418_s26  ;;  %p4425_p6 = scmp.lt.u32.totalorder %s4423_s24, %s4418_s26 }
  0x46   : > { %p4427_p11 = scmp.lt.u32.totalorder %s4418_s26, %s4726_s17 }
  0x47   : > { %p4421_p3 = pnand %p4419_p2, %p4680_p10  ;;  %p4426_p9 = por %p4425_p6, %p4424_p5 }
  0x49   : > { %p4422_p4 = pneg %p4421_p3  ;;  %p4428_p13 = por %p4427_p11, %p4426_p9 }
  0x4b   : > { %p4429_p0 = pnand %p4428_p13, %p4422_p4 }
  0x4d   : > { %4432 = shalt.err (!%p4429_p0)
}
  0x4e   : > { %s4433_s0 = scalar_lea.vmem %s4728_s25, 3072  ;;  %s4521_s11 = smov [#allocation3]  }
  0x4f   : > { %p4434_p7 = scmp.ne.s32.totalorder %s4728_s25, %s4433_s0  ;;  %s4438_s21 = sshll.u32 %s4521_s11, 4  ;;  %s4439_s21 = int_to_ptr.vmem [resolvable:$false] %s4438_s21 }
  0x50   : > { %s4440_s2 = scalar_lea.vmem %s4439_s21, 6144  ;;  %p4441_p3 = scmp.lt.s32.totalorder %s4728_s25, %s4439_s21 }
  0x51   : > { %p4436_p12 = pnand %p4434_p7, %p4680_p10  ;;  %p4442_p1 = scmp.lt.s32.totalorder %s4440_s2, %s4433_s0 }
  0x53   : > { %p4437_p2 = pneg %p4436_p12  ;;  %p4443_p5 = por %p4442_p1, %p4441_p3 }
  0x55   : > { %p4444_p6 = pnand %p4443_p5, %p4437_p2 }
  0x57   : > { %4447 = shalt.err (!%p4444_p6)
}
  0x58   : > { %s4522_s26 = smov 192   ;;  %s4523_s24 = smov 12  }
  0x59   : > { %3972 = dma.hbm_to_vmem [thread:$0]  (!%p4656_p8), %s4726_s17, 3072, %s4728_s25, %s467_s30, %s4522_s26, %s4522_s26, %s4523_s24  }
  0x5a   : > { %s4448_s23 = scalar_lea.hbm %s4709_s18, 4096  ;;  %s4453_s11 = scalar_lea.hbm %s5611_s13, 8192 }
  0x5b   : > { %p4449_p4 = scmp.ne.s32.totalorder %s4709_s18, %s4448_s23  ;;  %p4454_p11 = scmp.lt.u32.totalorder %s4709_s18, %s5611_s13 }
  0x5c   : > { %p4455_p13 = scmp.lt.u32.totalorder %s4453_s11, %s4448_s23  ;;  %p4457_p7 = scmp.lt.u32.totalorder %s4448_s23, %s4709_s18 }
  0x5d   : > { %p4451_p1 = pnand %p4449_p4, %p4680_p10 }
  0x5e   : > { %p4456_p0 = por %p4455_p13, %p4454_p11 }
  0x5f   : > { %p4452_p9 = pneg %p4451_p1 }
  0x60   : > { %p4458_p12 = por %p4457_p7, %p4456_p0 }
  0x62   : > { %p4459_p2 = pnand %p4458_p12, %p4452_p9 }
  0x64   : > { %4462 = shalt.err (!%p4459_p2)
}
  0x65   : > { %s4463_s28 = scalar_lea.vmem %s4714_s1, 4096  ;;  %s4524_s17 = smov [#allocation7]  }
  0x66   : > { %p4464_p3 = scmp.ne.s32.totalorder %s4714_s1, %s4463_s28  ;;  %s4468_s25 = sshll.u32 %s4524_s17, 4  ;;  %s4469_s25 = int_to_ptr.vmem [resolvable:$false] %s4468_s25 }
  0x67   : > { %s4470_s30 = scalar_lea.vmem %s4469_s25, 8192  ;;  %p4471_p4 = scmp.lt.s32.totalorder %s4714_s1, %s4469_s25 }
  0x68   : > { %p4466_p5 = pnand %p4464_p3, %p4680_p10  ;;  %p4472_p1 = scmp.lt.s32.totalorder %s4470_s30, %s4463_s28 }
  0x6a   : > { %p4467_p6 = pneg %p4466_p5  ;;  %p4473_p11 = por %p4472_p1, %p4471_p4 }
  0x6c   : > { %p4474_p13 = pnand %p4473_p11, %p4467_p6 }
  0x6e   : > { %4477 = shalt.err (!%p4474_p13)
}
  0x6f   : > { %s4525_s26 = smov 64   ;;  %s4526_s24 = smov 4  }
  0x70   : > { %3978 = dma.hbm_to_vmem [thread:$0]  (!%p4656_p8), %s4709_s18, 4096, %s4714_s1, %s4674_s20, %s4525_s26, %s4525_s26, %s4526_s24  }
  0x71   : > { %p5615_p10 = scmp.ne.s32.totalorder %s5613_s14, 0 }
  0x72   : > { %s579_s16 = sand.u32 (!%p5615_p10), 1, %s4508_s19   ;;  %p5616_p9 = scmp.ne.s32.totalorder (!%p5615_p10), %s5606_s27, 0 }
  0x73   : > { %577 = sbr.rel (%p5615_p10) target bundleno = 3087 (0xc0f), region = 80  ;;  %s580_s15 = scalar_lea.sflag (!%p5615_p10), [#allocation4], %s579_s16 }
  0x74   : > { %s3961_s23 = smul.u32 (!%p5615_p10), 192, %s579_s16 }
  0x76   : > { %s4779_s0 = scalar_lea.vmem (!%p5615_p10), [#allocation3], %s3961_s23 }
  0x7a   : > { %4495 = dma.done.wait (%p5616_p9), %s580_s15, 3072  }
  0x7b   : > { %4497 = vsyncadd (%p5616_p9), %s580_s15, 4294964224  ;;  %s588_s11 = sand.u32 1, %s4632_s22   ;;  %s3555_s29 = sshll.u32 %s579_s16, 8 }
  0x7c   : > { %s589_s1 = scalar_lea.sflag [#allocation6], %s588_s11  ;;  %s4786_s20 = scalar_lea.vmem [#allocation5], %s3555_s29 }
  0x7d   : > { %4499 = dma.done.wait (%p5616_p9), %s589_s1, 8192  }
  0x7e   : > { %4501 = vsyncadd (%p5616_p9), %s589_s1, 4294959104  ;;  %p684_p8 = scmp.lt.s32.totalorder %s4632_s22, 1  ;;  %s5617_s7 = sld [smem:[#allocation17_spill]] }
  0x7f   : > { %s5618_s11 = sld [smem:[#allocation20_spill]]  ;;  %p3560_p0 = scmp.ne.s32.totalorder %s4632_s22, 0 }
  0x80   : > { %s4794_s14 = scalar_select %p684_p8, %s4632_s22, 1 }
  0x81   : > { %719 = sbr.rel (%p3560_p0) target bundleno = 140 (0x8c), region = 96  ;;  %s5619_s18 = sld [smem:[#allocation13_spill]] (!%p3560_p0) }
  0x82   : > { %s3962_s25 = smul.u32 3, %s4794_s14  ;;  %s3690_s30 = sshll.u32 %s4794_s14, 6 }
  0x83   : > { %s707_s13 = scalar_lea.vmem %s5580_s10, %s4794_s14  ;;  %s3559_s26 = sshll.u32 %s4794_s14, 2 }
  0x84   : > { %s4809_s16 = scalar_lea.vmem %s5617_s7, %s3690_s30  ;;  %s4818_s21 = scalar_lea.vmem %s5576_s6, %s3962_s25 }
  0x85   : > { %s4832_s7 = scalar_lea.vmem %s5582_s12, %s3559_s26  ;;  %s714_s1 = scalar_lea.vmem %s5618_s11, %s4794_s14 }
  0x86   : > { %s4838_s25 = scalar_lea.vmem [#allocation7], %s3555_s29 }
  0x87   : > { %s5620_s27 = smov (!%p3560_p0), %s5619_s18  ;;  %v3696_v0 = vld [vmem:[%s5619_s18] sm:$0xff] (!%p3560_p0)  }
  0x88   : > { %v3713_v1 = vld [vmem:[%s5620_s27 + $0x8] sm:$0xff]   ;;  %v3697_v2 = vunpack.c.l.bf16 %v3696_v0  ;;  %v3698_v3 = vunpack.c.h.bf16 %v3696_v0 }
  0x89   : > { %v3701_v4 = vunpack.c.l.bf16 %v3713_v1  ;;  %v3702_v5 = vunpack.c.h.bf16 %v3713_v1 }
  0x8a   : > { %728 = vst [vmem:[#allocation2] sm:$0xff] %v3697_v2  ;;  %729 = vst [vmem:[#allocation2 + $0x8] sm:$0xff] %v3698_v3 }
  0x8b   : > { %730 = vst [vmem:[#allocation2 + $0x10] sm:$0xff] %v3701_v4  ;;  %731 = vst [vmem:[#allocation2 + $0x18] sm:$0xff] %v3702_v5 }
  0x8c PF: > { %v4144_v10 = vld [vmem:[%s4779_s0 + $0x4] ss:$12 sps:$4 sm:$0xff]   ;;  %v4146_v11 = vld [vmem:[%s4779_s0] ss:$12 sps:$4 sm:$0xff]   ;;  %v4147_v12 = vld [vmem:[%s4779_s0 + $0x1c] ss:$12 sps:$4 sm:$0xff]   ;;  %s5621_s11 = scalar_lea.vmem %s5573_s3, %s4794_s14  ;;  %s5622_s24 = scalar_lea.vmem %s5574_s4, %s4794_s14 }
  0x8d   : > { %v4149_v13 = vld [vmem:[%s4779_s0 + $0x8] ss:$12 sps:$4 sm:$0xff]   ;;  %982 = vmatprep.subr.bf16.mxu0 %v4144_v10  ;;  %v4150_v30 = vld [vmem:[%s4779_s0 + $0x18] ss:$12 sps:$4 sm:$0xff]   ;;  %v4153_v32 = vld [vmem:[%s4779_s0 + $0x20] ss:$12 sps:$4 sm:$0xff]   ;;  %s5627_s2 = scalar_lea.vmem %s5578_s8, %s4794_s14  ;;  %s5628_s17 = scalar_lea.vmem %s5579_s9, %s4794_s14 }
  0x8e   : > { %983 = vmatpush1.bf16.msra.mxu0 %v4146_v11  ;;  %3823 = vmatprep.subr.bf16.mxu1 %v4149_v13  ;;  %v4151_v31 = vld [vmem:[%s4779_s0 + $0x34] ss:$12 sps:$4 sm:$0xff]   ;;  %v4154_v33 = vld [vmem:[%s4779_s0 + $0x30] ss:$12 sps:$4 sm:$0xff]   ;;  %v4155_v34 = vld [vmem:[%s4779_s0 + $0x4c] ss:$12 sps:$4 sm:$0xff]  }
  0x8f   : > { %984 = vmatprep.subr.bf16.mxu0 %v4147_v12  ;;  %3824 = vmatpush3.bf16.msra.mxu1 %v4149_v13  ;;  %v4157_v35 = vld [vmem:[%s4779_s0 + $0x38] ss:$12 sps:$4 sm:$0xff]   ;;  %v4158_v36 = vld [vmem:[%s4779_s0 + $0x48] ss:$12 sps:$4 sm:$0xff]   ;;  %v4161_v38 = vld [vmem:[%s4779_s0 + $0x50] ss:$12 sps:$4 sm:$0xff]  }
  0x90   : > { %3825 = vmatprep.subr.bf16.mxu1 %v4153_v32  ;;  %v4159_v37 = vld [vmem:[%s4779_s0 + $0x64] ss:$12 sps:$4 sm:$0xff]   ;;  %v4162_v39 = vld [vmem:[%s4779_s0 + $0x60] ss:$12 sps:$4 sm:$0xff]   ;;  %v4163_v40 = vld [vmem:[%s4779_s0 + $0x7c] ss:$12 sps:$4 sm:$0xff]  }
  0x91   : > { %v732_v6 = vld [vmem:[#allocation2] sm:$0xff]  ;;  %v733_v8 = vld [vmem:[#allocation2 + $0x8] sm:$0xff]  ;;  %v4527_v45 = vmov 0   ;;  %v4170_v46 = vld [vmem:[%s4779_s0 + $0x90] ss:$12 sps:$4 sm:$0xff]   ;;  %vm4529_vm0 = vmmov 0  }
  0x92   : > { %v734_v7 = vld [vmem:[#allocation2 + $0x10] sm:$0xff]  ;;  %738 = vadd.xlane.f32.xlu0 %v732_v6  ;;  %v735_v9 = vld [vmem:[#allocation2 + $0x18] sm:$0xff]  ;;  %985 = vmatpush1.bf16.msra.mxu0 %v4150_v30  ;;  %v4169_v44 = vld [vmem:[%s4779_s0 + $0x80] ss:$12 sps:$4 sm:$0xff]   ;;  %vm1235_vm1 = vcmask 261120   ;;  %s4531_s23 = smov 64  }
  0x93   : > { %742 = vadd.xlane.f32.xlu1 %v734_v7  ;;  %986 = vmatprep.subr.bf16.mxu0 %v4151_v31  ;;  %v4165_v41 = vld [vmem:[%s4779_s0 + $0x68] ss:$12 sps:$4 sm:$0xff]   ;;  %v4166_v42 = vld [vmem:[%s4779_s0 + $0x78] ss:$12 sps:$4 sm:$0xff]   ;;  %v4175_v50 = vld [vmem:[%s4779_s0 + $0xb0] ss:$12 sps:$4 sm:$0xff]  }
  0x94   : > { %3826 = vmatpush3.bf16.msra.mxu1 %v4153_v32  ;;  %v4167_v43 = vld [vmem:[%s4779_s0 + $0x94] ss:$12 sps:$4 sm:$0xff]   ;;  %1014 = vmatprep.mubr.bf16.mxu0 %v4527_v45  ;;  %v4171_v47 = vld [vmem:[%s4779_s0 + $0xac] ss:$12 sps:$4 sm:$0xff]   ;;  %s4532_s15 = smov 32   ;;  %vm1648_vm3 = vcmask 130048  }
  0x95   : > { %3827 = vmatprep.subr.bf16.mxu1 %v4157_v35  ;;  %v4173_v48 = vld [vmem:[%s4779_s0 + $0x98] ss:$12 sps:$4 sm:$0xff]   ;;  %v4174_v49 = vld [vmem:[%s4779_s0 + $0xa8] ss:$12 sps:$4 sm:$0xff]   ;;  %v3561_v1 = vld [vmem:[%s5621_s11] ss:$0 sm:$0xff] }
  0x96   : > { %740 = vadd.xlane.f32.xlu0 %v733_v8  ;;  %987 = vmatpush1.bf16.msra.mxu0 %v4154_v33  ;;  %vm2237_vm5 = vcmask 523264   ;;  %vm2242_vm6 = vcmask 785408   ;;  %p3679_p7 = scmp.ne.s32.totalorder %s4632_s22, 1 }
  0x97   : > { %744 = vadd.xlane.f32.xlu1 %v735_v9  ;;  %988 = vmatprep.subr.bf16.mxu0 %v4155_v34  ;;  %s5631_s26 = sld [smem:[#allocation15_spill]] (!%p3679_p7) }
  0x98   : > { %3828 = vmatpush3.bf16.msra.mxu1 %v4157_v35 }
  0x99   : > { %3829 = vmatprep.subr.bf16.mxu1 %v4161_v38 }
  0x9a   : > { %989 = vmatpush1.bf16.msra.mxu0 %v4158_v36 }
  0x9b   : > { %990 = vmatprep.subr.bf16.mxu0 %v4159_v37 }
  0x9c   : > { %3830 = vmatpush3.bf16.msra.mxu1 %v4161_v38 }
  0x9d   : > { %3831 = vmatprep.subr.bf16.mxu1 %v4165_v41 }
  0x9e   : > { %991 = vmatpush1.bf16.msra.mxu0 %v4162_v39 }
  0x9f   : > { %992 = vmatprep.subr.bf16.mxu0 %v4163_v40 }
  0xa0   : > { %3832 = vmatpush3.bf16.msra.mxu1 %v4165_v41 }
  0xa1   : > { %3833 = vmatprep.subr.bf16.mxu1 %v4169_v44 }
  0xa2   : > { %993 = vmatpush1.bf16.msra.mxu0 %v4166_v42 }
  0xa3   : > { %994 = vmatprep.subr.bf16.mxu0 %v4167_v43 }
  0xa4   : > { %3834 = vmatpush3.bf16.msra.mxu1 %v4169_v44 }
  0xa5   : > { %3835 = vmatprep.subr.bf16.mxu1 %v4173_v48 }
  0xa6   : > { %995 = vmatpush1.bf16.msra.mxu0 %v4170_v46 }
  0xa7   : > { %996 = vmatprep.subr.bf16.mxu0 %v4171_v47 }
  0xa8   : > { %3836 = vmatpush3.bf16.msra.mxu1 %v4173_v48 }
  0xa9   : > { %3837 = vmatprep.subr.bf16.mxu1 %v4175_v50 }
  0xaa   : > { %997 = vmatpush1.bf16.msra.mxu0 %v4174_v49 }
  0xac   : > { %3838 = vmatpush3.bf16.msra.mxu1 %v4175_v50 }
 0x11f   : > { %v739_v14 = vpop.xlane.xlu0 %738 }
 0x120   : > { %v743_v15 = vpop.xlane.xlu1 %742  ;;  %v747_v16 = vmul.f32 0.0078125, %v739_v14 }
 0x121   : > { %v749_v17 = vmul.f32 0.0078125, %v743_v15 }
 0x122   : > { %v4851_v18 = vsub.f32 %v732_v6, %v747_v16  ;;  %v3562_v6 = vld [vmem:[%s5622_s24] ss:$0 sm:$0xff] }
 0x123   : > { %v4853_v19 = vsub.f32 %v734_v7, %v749_v17  ;;  %v741_v20 = vpop.xlane.xlu0 %740 }
 0x124   : > { %v745_v21 = vpop.xlane.xlu1 %744  ;;  %v748_v22 = vmul.f32 0.0078125, %v741_v20  ;;  %v755_v23 = vmul.f32 %v4851_v18, %v4851_v18  ;;  %v839_v20 = vlaneseq }
 0x125   : > { %v750_v24 = vmul.f32 0.0078125, %v745_v21  ;;  %v757_v27 = vmul.f32 %v4853_v19, %v4853_v19 }
 0x126   : > { %v4857_v25 = vsub.f32 %v733_v8, %v748_v22  ;;  %759 = vadd.xlane.f32.xlu0 %v755_v23  ;;  %v4910_v21 = vshrl.u32 %v839_v20, 7  ;;  %v837_v23 = vld [vmem:[%s4818_s21] sm:$0x7]  ;;  %s4530_s21 = smov 96  }
 0x127   : > { %v4859_v26 = vsub.f32 %v735_v9, %v750_v24 }
 0x128   : > { %v756_v28 = vmul.f32 %v4857_v25, %v4857_v25  ;;  %v841_v22 = vsub.s32 0, %v4910_v21  ;;  %v845_v24 = vsub.s32 1, %v4910_v21 }
 0x129   : > { %v758_v29 = vmul.f32 %v4859_v26, %v4859_v26 }
 0x12a   : > { %763 = vadd.xlane.f32.xlu0 %v757_v27  ;;  %761 = vadd.xlane.f32.xlu1 %v756_v28  ;;  %v846_v28 = vrot.slane %v837_v23, %v845_v24 }
 0x12e   : > { %765 = vadd.xlane.f32.xlu1 %v758_v29 }
 0x1b3   : > { %v760_v51 = vpop.xlane.xlu0 %759 }
 0x1b4   : > { %v767_v52 = vmul.f32 0.0078125, %v760_v51 }
 0x1b6   : > { %v771_v53 = vadd.f32 1e-05, %v767_v52 }
 0x1b7   : > { %v762_v54 = vpop.xlane.xlu1 %761  ;;  %v764_v55 = vpop.xlane.xlu0 %763 }
 0x1b8   : > { %4264 = vrsqrt.f32 %v771_v53  ;;  %v768_v56 = vmul.f32 0.0078125, %v762_v54  ;;  %v769_v57 = vmul.f32 0.0078125, %v764_v55 }
 0x1ba   : > { %v772_v58 = vadd.f32 1e-05, %v768_v56  ;;  %v773_v59 = vadd.f32 1e-05, %v769_v57 }
 0x1bb   : > { %v766_v60 = vpop.xlane.xlu1 %765 }
 0x1bc   : > { %4266 = vrsqrt.f32 %v772_v58  ;;  %v770_v61 = vmul.f32 0.0078125, %v766_v60 }
 0x1bd   : > { %4268 = vrsqrt.f32 %v773_v59 }
 0x1be   : > { %v774_v62 = vadd.f32 1e-05, %v770_v61 }
 0x1c0   : > { %4270 = vrsqrt.f32 %v774_v62 }
 0x1c2   : > { %v4265_v63 = vpop.eup %4264 }
 0x1c3   : > { %v779_v0 = vmul.f32 %v4265_v63, %v4851_v18 }
 0x1c5   : > { %v789_v5 = vmul.f32 %v3561_v1, %v779_v0 }
 0x1c6   : > { %v4267_v2 = vpop.eup %4266 }
 0x1c7   : > { %v4269_v3 = vpop.eup %4268  ;;  %v780_v4 = vmul.f32 %v4267_v2, %v4857_v25  ;;  %v799_v10 = vadd.f32 %v3562_v6, %v789_v5  ;;  %v842_v25 = vrot.slane %v837_v23, %v841_v22 }
 0x1c8   : > { %v781_v7 = vmul.f32 %v4269_v3, %v4853_v19  ;;  %v4528_v19 = vmov 0.0  }
 0x1c9   : > { %v790_v8 = vmul.f32 %v3561_v1, %v780_v4  ;;  %3843 = vmatprep.subr.bf16.mxu0 %v4528_v19  ;;  %3855 = vmatprep.subr.bf16.mxu1 %v4528_v19 }
 0x1ca   : > { %v4271_v9 = vpop.eup %4270  ;;  %v791_v13 = vmul.f32 %v3561_v1, %v781_v7 }
 0x1cb   : > { %v800_v11 = vadd.f32 %v3562_v6, %v790_v8  ;;  %v782_v12 = vmul.f32 %v4271_v9, %v4859_v26  ;;  %v849_v26 = vsub.s32 2, %v4910_v21 }
 0x1cc   : > { %v801_v16 = vadd.f32 %v3562_v6, %v791_v13 }
 0x1cd   : > { %v803_v14 = vpack.c.bf16 %v800_v11, %v799_v10  ;;  %v792_v15 = vmul.f32 %v3561_v1, %v782_v12  ;;  %v850_v34 = vrot.slane %v837_v23, %v849_v26 }
 0x1cf   : > { %1015 = vmatmul.mubr.bf16.vlgmr.msra.gmra.mrb[0].mxu0 %v803_v14  ;;  %3839 = vmatprep.mubr.bf16.mxu1 %v803_v14  ;;  %v802_v17 = vadd.f32 %v3562_v6, %v792_v15 }
 0x1d0   : > { %1024 = vmatprep.mubr.bf16.mxu0 %v4527_v45 }
 0x1d1   : > { %v804_v18 = vpack.c.bf16 %v802_v17, %v801_v16 }
 0x1d3   : > { %3840 = vmatmul.mubr.bf16.vlgmr.msra.gmra.mrb[0].mxu1 %v804_v18 }
 0x1d4   : > { %3857 = vmatprep.mubr.msk.bf16.mxu1 %vm4529_vm0, %v4528_v19 }
 0x1d7   : > { %1025 = vmatmul.mubr.bf16.gmra.mrb[4].mxu0 %v804_v18 }
 0x1d8   : > { %3845 = vmatprep.mubr.msk.bf16.mxu0 %vm4529_vm0, %v4528_v19 }
 0x2a2   : > { %v1016_v27 = vpop.f32.mrb[0].mxu0 }
 0x2a3   : > { %v1018_v29 = vpop.f32.mrb[1].mxu0  ;;  %v1017_v31 = vadd.f32 %v1016_v27, %v842_v25 }
 0x2a4   : > { %v1020_v30 = vpop.f32.mrb[2].mxu0  ;;  %v1019_v35 = vadd.f32 %v1018_v29, %v846_v28 }
 0x2a5   : > { %v1021_v32 = vadd.f32 %v1020_v30, %v842_v25  ;;  %v1022_v33 = vpop.f32.mrb[3].mxu0 }
 0x2a6   : > { %v1023_v36 = vadd.f32 %v1022_v33, %v846_v28  ;;  %v3841_v37 = vpop.f32.mrb[0].mxu1 }
 0x2a7   : > { %v1124_v38 = vpack.c.bf16 %v1021_v32, %v1017_v31  ;;  %v1069_v39 = vpop.f32.mrb[1].mxu1  ;;  %v4029_v40 = vpack.i.bf16 %v1021_v32, %v1017_v31  ;;  %v4922_v44 = vadd.f32 %v3841_v37, %v850_v34 }
 0x2a8   : > { %v3842_v41 = vpop.f32.mrb[2].mxu1  ;;  %v4024_v42 = vpack.i.bf16 %v1023_v36, %v1019_v35  ;;  %v1172_v43 = vpack.c.bf16 %v1023_v36, %v1019_v35  ;;  %v4927_v48 = vadd.f32 %v1069_v39, %v850_v34 }
 0x2a9   : > { %v4924_v46 = vadd.f32 %v3842_v41, %v850_v34  ;;  %4030 = vrot.lane.b32.xlu1 %v4029_v40, %s4530_s21  ;;  %v1072_v47 = vpop.f32.mrb[3].mxu1 }
 0x2aa   : > { %v4929_v49 = vadd.f32 %v1072_v47, %v850_v34  ;;  %4025 = vrot.lane.b32.xlu0 %v4024_v42, %s4530_s21  ;;  %v1026_v50 = vpop.f32.mrb[4].mxu0  ;;  %v1240_v51 = vsel %vm1235_vm1, %v1172_v43, 0 }
 0x2ab   : > { %v1028_v52 = vpop.f32.mrb[5].mxu0  ;;  %3844 = vmatpush3.bf16.xpose.msra.mxu0 %v1240_v51  ;;  %v1221_v53 = vpack.c.bf16 %v4924_v46, %v4922_v44  ;;  %v4937_v54 = vpack.i.bf16 %v4924_v46, %v4922_v44  ;;  %v1027_v58 = vadd.f32 %v1026_v50, %v842_v25 }
 0x2ac   : > { %v1030_v55 = vpop.f32.mrb[6].mxu0  ;;  %3849 = vmatprep.subr.bf16.mxu0 %v4528_v19  ;;  %v1220_v56 = vpack.c.bf16 %v4929_v49, %v4927_v48  ;;  %v4944_v57 = vpack.i.bf16 %v4929_v49, %v4927_v48  ;;  %v1029_v61 = vadd.f32 %v1028_v52, %v846_v28  ;;  %v1232_v48 = vand.u32 127, %v839_v20 }
 0x2ad   : > { %v1031_v59 = vadd.f32 %v1030_v55, %v842_v25  ;;  %v1032_v60 = vpop.f32.mrb[7].mxu0  ;;  %v1230_v49 = vadd.s32 8, %v4910_v21 }
 0x2ae   : > { %v1033_v62 = vadd.f32 %v1032_v60, %v846_v28  ;;  %vm5005_vm2 = vcmp.le.s32.totalorder %v1232_v48, %v4910_v21 }
 0x2af   : > { %v1125_v63 = vpack.c.bf16 %v1031_v59, %v1027_v58  ;;  %v4044_v0 = vpack.i.bf16 %v1031_v59, %v1027_v58  ;;  %vm5009_vm4 = vcmp.le.s32.totalorder %v1232_v48, %v1230_v49 }
 0x2b0   : > { %v4034_v1 = vpack.i.bf16 %v1033_v62, %v1029_v61  ;;  %v1173_v2 = vpack.c.bf16 %v1033_v62, %v1029_v61 }
 0x2b1   : > { %4045 = vrot.lane.b32.xlu0 %v4044_v0, %s4530_s21 }
 0x2b2   : > { %3846 = vmatmul.mubr.msk.bf16.vlgmr.msra.gmra.mrb[8].mxu0 %vm1235_vm1, %v1124_v38  ;;  %4035 = vrot.lane.b32.xlu1 %v4034_v1, %s4530_s21  ;;  %v1287_v3 = vsel %vm1235_vm1, %v1173_v2, 0 }
 0x2b3   : > { %3850 = vmatpush3.bf16.xpose.msra.mxu0 %v1287_v3  ;;  %3851 = vmatprep.mubr.msk.bf16.mxu0 %vm4529_vm0, %v4528_v19 }
 0x2b4   : > { %3861 = vmatprep.subr.bf16.mxu0 %v4528_v19 }
 0x2b5   : > { %4050 = vrot.lane.b32.xlu0 %v4029_v40, %s4531_s23 }
 0x2b6   : > { %4040 = vrot.lane.b32.xlu1 %v4024_v42, %s4531_s23 }
 0x2b9   : > { %4065 = vrot.lane.b32.xlu0 %v4044_v0, %s4531_s23 }
 0x2ba   : > { %4055 = vrot.lane.b32.xlu1 %v4034_v1, %s4531_s23  ;;  %3852 = vmatmul.mubr.msk.bf16.vlgmr.msra.gmra.mrb[12].mxu0 %vm1235_vm1, %v1125_v63 }
 0x2bb   : > { %3863 = vmatprep.mubr.msk.bf16.mxu0 %vm4529_vm0, %v4528_v19 }
 0x2bd   : > { %4075 = vrot.lane.b32.xlu0 %v4029_v40, %s4532_s15 }
 0x2be   : > { %4060 = vrot.lane.b32.xlu1 %v4024_v42, %s4532_s15 }
 0x2c2   : > { %4070 = vrot.lane.b32.xlu1 %v4034_v1, %s4532_s15 }
 0x2c6   : > { %4080 = vrot.lane.b32.xlu1 %v4044_v0, %s4532_s15 }
 0x31b   : > { %v4031_v8 = vpop.permute.xlu1 %4030 }
 0x31c   : > { %v4026_v4 = vpop.permute.xlu0 %4025  ;;  %v4033_v10 = vunpack.i.h.bf16 %v4031_v8  ;;  %v4032_v11 = vunpack.i.l.bf16 %v4031_v8 }
 0x31d   : > { %v4028_v5 = vunpack.i.h.bf16 %v4026_v4  ;;  %v4027_v6 = vunpack.i.l.bf16 %v4026_v4 }
 0x31e   : > { %v1126_v16 = vpack.c.bf16 %v4033_v10, %v4032_v11 }
 0x31f   : > { %v1174_v7 = vpack.c.bf16 %v4028_v5, %v4027_v6 }
 0x321   : > { %v1334_v9 = vsel %vm1235_vm1, %v1174_v7, 0 }
 0x322   : > { %3856 = vmatpush3.bf16.xpose.msra.mxu1 %v1334_v9 }
 0x323   : > { %v4046_v12 = vpop.permute.xlu0 %4045  ;;  %3867 = vmatprep.subr.bf16.mxu1 %v4528_v19 }
 0x324   : > { %v4036_v13 = vpop.permute.xlu1 %4035  ;;  %v4048_v29 = vunpack.i.h.bf16 %v4046_v12  ;;  %v4047_v30 = vunpack.i.l.bf16 %v4046_v12 }
 0x325   : > { %v4038_v14 = vunpack.i.h.bf16 %v4036_v13  ;;  %v4037_v15 = vunpack.i.l.bf16 %v4036_v13 }
 0x326   : > { %v1127_v37 = vpack.c.bf16 %v4048_v29, %v4047_v30 }
 0x327   : > { %v1175_v17 = vpack.c.bf16 %v4038_v14, %v4037_v15  ;;  %v4051_v18 = vpop.permute.xlu0 %4050 }
 0x328   : > { %v4041_v23 = vpop.permute.xlu1 %4040  ;;  %v4053_v38 = vunpack.i.h.bf16 %v4051_v18  ;;  %v4052_v39 = vunpack.i.l.bf16 %v4051_v18 }
 0x329   : > { %v4043_v25 = vunpack.i.h.bf16 %v4041_v23  ;;  %v4042_v27 = vunpack.i.l.bf16 %v4041_v23  ;;  %3858 = vmatmul.mubr.msk.bf16.vlgmr.msra.gmra.mrb[4].mxu1 %vm1235_vm1, %v1126_v16  ;;  %v1381_v28 = vsel %vm1235_vm1, %v1175_v17, 0 }
 0x32a   : > { %3862 = vmatpush3.bf16.xpose.msra.mxu0 %v1381_v28  ;;  %3869 = vmatprep.mubr.msk.bf16.mxu1 %vm4529_vm0, %v4528_v19  ;;  %v1128_v50 = vpack.c.bf16 %v4053_v38, %v4052_v39 }
 0x32b   : > { %v1176_v31 = vpack.c.bf16 %v4043_v25, %v4042_v27  ;;  %3873 = vmatprep.subr.bf16.mxu0 %v4528_v19  ;;  %v4066_v36 = vpop.permute.xlu0 %4065 }
 0x32c   : > { %v4056_v32 = vpop.permute.xlu1 %4055  ;;  %v4068_v51 = vunpack.i.h.bf16 %v4066_v36  ;;  %v4067_v52 = vunpack.i.l.bf16 %v4066_v36 }
 0x32d   : > { %v4058_v33 = vunpack.i.h.bf16 %v4056_v32  ;;  %v4057_v34 = vunpack.i.l.bf16 %v4056_v32  ;;  %v1428_v35 = vsel %vm1235_vm1, %v1176_v31, 0 }
 0x32e   : > { %3868 = vmatpush3.bf16.xpose.msra.mxu1 %v1428_v35  ;;  %v1129_v63 = vpack.c.bf16 %v4068_v51, %v4067_v52 }
 0x32f   : > { %v1177_v40 = vpack.c.bf16 %v4058_v33, %v4057_v34  ;;  %3879 = vmatprep.subr.bf16.mxu1 %v4528_v19  ;;  %v4076_v58 = vpop.permute.xlu0 %4075 }
 0x330   : > { %v4061_v41 = vpop.permute.xlu1 %4060  ;;  %v4078_v0 = vunpack.i.h.bf16 %v4076_v58  ;;  %v4077_v1 = vunpack.i.l.bf16 %v4076_v58 }
 0x331   : > { %v4063_v42 = vunpack.i.h.bf16 %v4061_v41  ;;  %v4062_v43 = vunpack.i.l.bf16 %v4061_v41  ;;  %3864 = vmatmul.mubr.msk.bf16.vlgmr.msra.gmra.mrb[16].mxu0 %vm1235_vm1, %v1127_v37  ;;  %v1475_v47 = vsel %vm1235_vm1, %v1177_v40, 0 }
 0x332   : > { %3874 = vmatpush3.bf16.xpose.msra.mxu0 %v1475_v47  ;;  %3875 = vmatprep.mubr.msk.bf16.mxu0 %vm4529_vm0, %v4528_v19  ;;  %v1130_v5 = vpack.c.bf16 %v4078_v0, %v4077_v1 }
 0x333   : > { %v1178_v55 = vpack.c.bf16 %v4063_v42, %v4062_v43  ;;  %3885 = vmatprep.subr.bf16.mxu0 %v4528_v19 }
 0x334   : > { %v4071_v59 = vpop.permute.xlu1 %4070 }
 0x335   : > { %v4073_v60 = vunpack.i.h.bf16 %v4071_v59  ;;  %v4072_v61 = vunpack.i.l.bf16 %v4071_v59  ;;  %3870 = vmatmul.mubr.msk.bf16.vlgmr.msra.gmra.mrb[8].mxu1 %vm1235_vm1, %v1128_v50  ;;  %v1522_v62 = vsel %vm1235_vm1, %v1178_v55, 0 }
 0x336   : > { %3880 = vmatpush3.bf16.xpose.msra.mxu1 %v1522_v62  ;;  %3881 = vmatprep.mubr.msk.bf16.mxu1 %vm4529_vm0, %v4528_v19 }
 0x337   : > { %v1179_v2 = vpack.c.bf16 %v4073_v60, %v4072_v61  ;;  %3891 = vmatprep.subr.bf16.mxu1 %v4528_v19 }
 0x338   : > { %v4081_v3 = vpop.permute.xlu1 %4080 }
 0x339   : > { %3876 = vmatmul.mubr.msk.bf16.vlgmr.msra.gmra.mrb[20].mxu0 %vm1235_vm1, %v1129_v63  ;;  %v1569_v4 = vsel %vm1235_vm1, %v1179_v2, 0  ;;  %v4083_v6 = vunpack.i.h.bf16 %v4081_v3  ;;  %v4082_v7 = vunpack.i.l.bf16 %v4081_v3 }
 0x33a   : > { %3886 = vmatpush3.bf16.xpose.msra.mxu0 %v1569_v4  ;;  %3887 = vmatprep.mubr.msk.bf16.mxu0 %vm4529_vm0, %v4528_v19 }
 0x33b   : > { %3897 = vmatprep.subr.bf16.mxu0 %v4528_v19  ;;  %v1131_v8 = vpack.c.bf16 %v4083_v6, %v4082_v7 }
 0x33d   : > { %3882 = vmatmul.mubr.msk.bf16.vlgmr.msra.gmra.mrb[12].mxu1 %vm1235_vm1, %v1130_v5 }
 0x33e   : > { %3892 = vmatpush3.bf16.msra.mxu1 %v1220_v56  ;;  %3893 = vmatprep.mubr.msk.bf16.mxu1 %vm4529_vm0, %v4528_v19 }
 0x33f   : > { %3903 = vmatprep.subr.bf16.mxu1 %v4528_v19 }
 0x341   : > { %3888 = vmatmul.mubr.msk.bf16.vlgmr.msra.gmra.mrb[24].mxu0 %vm1235_vm1, %v1131_v8 }
 0x342   : > { %3898 = vmatpush3.bf16.msra.mxu0 %v1221_v53  ;;  %3899 = vmatprep.mubr.msk.bf16.mxu0 %vm4529_vm0, %v4528_v19 }
 0x343   : > { %3909 = vmatprep.subr.bf16.mxu0 %v4528_v19 }
 0x385   : > { %v1276_v56 = vpop.f32.mrb[8].mxu0 }
 0x386   : > { %v1612_v10 = vmul.f32 0.17677669, %v1276_v56  ;;  %v3847_v11 = vpop.f32.mrb[9].mxu0 }
 0x387   : > { %v1279_v44 = vpop.f32.mrb[10].mxu0 }
 0x388   : > { %v1613_v53 = vmul.f32 0.17677669, %v1279_v44  ;;  %v3848_v12 = vpop.f32.mrb[11].mxu0  ;;  %v5015_v20 = vsel %vm5005_vm2, %v1612_v10, -1e+10 }
 0x389   : > { %v1649_v13 = vsel %vm1648_vm3, %v5015_v20, -inf }
 0x38a   : > { %1650 = vmax.xlane.f32.xlu0 %v1649_v13  ;;  %v5021_v14 = vsel %vm5009_vm4, %v1613_v53, -1e+10 }
 0x38b   : > { %v1652_v15 = vsel %vm1648_vm3, %v5021_v14, -inf }
 0x38c   : > { %1653 = vmax.xlane.f32.xlu1 %v1652_v15 }
 0x38d   : > { %v1323_v16 = vpop.f32.mrb[12].mxu0 }
 0x38e   : > { %v1614_v17 = vmul.f32 0.17677669, %v1323_v16  ;;  %v3853_v18 = vpop.f32.mrb[13].mxu0 }
 0x38f   : > { %v1326_v23 = vpop.f32.mrb[14].mxu0 }
 0x390   : > { %v1615_v25 = vmul.f32 0.17677669, %v1326_v23  ;;  %v3854_v27 = vpop.f32.mrb[15].mxu0  ;;  %v5027_v28 = vsel %vm5005_vm2, %v1614_v17, -1e+10 }
 0x391   : > { %v1655_v29 = vsel %vm1648_vm3, %v5027_v28, -inf }
 0x392   : > { %1656 = vmax.xlane.f32.xlu0 %v1655_v29  ;;  %v5033_v30 = vsel %vm5009_vm4, %v1615_v25, -1e+10 }
 0x393   : > { %v1658_v31 = vsel %vm1648_vm3, %v5033_v30, -inf }
 0x396   : > { %1659 = vmax.xlane.f32.xlu0 %v1658_v31 }
 0x3fc   : > { %v1370_v32 = vpop.f32.mrb[4].mxu1 }
 0x3fd   : > { %v1616_v33 = vmul.f32 0.17677669, %v1370_v32  ;;  %v3859_v34 = vpop.f32.mrb[5].mxu1 }
 0x3fe   : > { %v1373_v35 = vpop.f32.mrb[6].mxu1 }
 0x3ff   : > { %v1617_v36 = vmul.f32 0.17677669, %v1373_v35  ;;  %v3860_v37 = vpop.f32.mrb[7].mxu1  ;;  %v5039_v38 = vsel %vm5005_vm2, %v1616_v33, -1e+10 }
 0x400   : > { %v1661_v39 = vsel %vm1648_vm3, %v5039_v38, -inf }
 0x401   : > { %1662 = vmax.xlane.f32.xlu0 %v1661_v39  ;;  %v5045_v40 = vsel %vm5009_vm4, %v1617_v36, -1e+10 }
 0x402   : > { %v1664_v41 = vsel %vm1648_vm3, %v5045_v40, -inf }
 0x403   : > { %1665 = vmax.xlane.f32.xlu1 %v1664_v41 }
 0x404   : > { %v1417_v42 = vpop.f32.mrb[16].mxu0 }
 0x405   : > { %v1618_v43 = vmul.f32 0.17677669, %v1417_v42  ;;  %v3865_v47 = vpop.f32.mrb[17].mxu0 }
 0x406   : > { %v1420_v50 = vpop.f32.mrb[18].mxu0 }
 0x407   : > { %v1619_v51 = vmul.f32 0.17677669, %v1420_v50  ;;  %v3866_v52 = vpop.f32.mrb[19].mxu0  ;;  %v5051_v55 = vsel %vm5005_vm2, %v1618_v43, -1e+10 }
 0x408   : > { %v1464_v58 = vpop.f32.mrb[8].mxu1  ;;  %v1667_v59 = vsel %vm1648_vm3, %v5051_v55, -inf }
 0x409   : > { %v1620_v60 = vmul.f32 0.17677669, %v1464_v58  ;;  %1668 = vmax.xlane.f32.xlu0 %v1667_v59  ;;  %v3871_v61 = vpop.f32.mrb[9].mxu1  ;;  %v5057_v62 = vsel %vm5009_vm4, %v1619_v51, -1e+10 }
 0x40a   : > { %v1467_v63 = vpop.f32.mrb[10].mxu1  ;;  %v1670_v0 = vsel %vm1648_vm3, %v5057_v62, -inf }
 0x40b   : > { %v1621_v1 = vmul.f32 0.17677669, %v1467_v63  ;;  %1671 = vmax.xlane.f32.xlu1 %v1670_v0  ;;  %v3872_v2 = vpop.f32.mrb[11].mxu1  ;;  %v5063_v3 = vsel %vm5005_vm2, %v1620_v60, -1e+10 }
 0x40c   : > { %v1511_v4 = vpop.f32.mrb[20].mxu0  ;;  %v1673_v5 = vsel %vm1648_vm3, %v5063_v3, -inf }
 0x40d   : > { %v1622_v6 = vmul.f32 0.17677669, %v1511_v4  ;;  %v3877_v7 = vpop.f32.mrb[21].mxu0  ;;  %1674 = vmax.xlane.f32.xlu0 %v1673_v5  ;;  %v5069_v8 = vsel %vm5009_vm4, %v1621_v1, -1e+10 }
 0x40e   : > { %v1514_v48 = vpop.f32.mrb[22].mxu0  ;;  %v1676_v49 = vsel %vm1648_vm3, %v5069_v8, -inf }
 0x40f   : > { %v1623_v56 = vmul.f32 0.17677669, %v1514_v48  ;;  %v3878_v10 = vpop.f32.mrb[23].mxu0  ;;  %1677 = vmax.xlane.f32.xlu1 %v1676_v49  ;;  %v5075_v11 = vsel %vm5005_vm2, %v1622_v6, -1e+10 }
 0x410   : > { %v1558_v44 = vpop.f32.mrb[12].mxu1  ;;  %v1679_v53 = vsel %vm1648_vm3, %v5075_v11, -inf }
 0x411   : > { %v1624_v12 = vmul.f32 0.17677669, %v1558_v44  ;;  %1680 = vmax.xlane.f32.xlu0 %v1679_v53  ;;  %v3883_v13 = vpop.f32.mrb[13].mxu1  ;;  %v5081_v15 = vsel %vm5009_vm4, %v1623_v56, -1e+10 }
 0x412   : > { %v1561_v16 = vpop.f32.mrb[14].mxu1  ;;  %v1682_v17 = vsel %vm1648_vm3, %v5081_v15, -inf }
 0x413   : > { %v1625_v18 = vmul.f32 0.17677669, %v1561_v16  ;;  %1683 = vmax.xlane.f32.xlu1 %v1682_v17  ;;  %v3884_v23 = vpop.f32.mrb[15].mxu1  ;;  %v5087_v25 = vsel %vm5005_vm2, %v1624_v12, -1e+10 }
 0x414   : > { %v1605_v27 = vpop.f32.mrb[24].mxu0  ;;  %v1685_v29 = vsel %vm1648_vm3, %v5087_v25, -inf }
 0x415   : > { %v1626_v31 = vmul.f32 0.17677669, %v1605_v27  ;;  %v3889_v32 = vpop.f32.mrb[25].mxu0  ;;  %1686 = vmax.xlane.f32.xlu0 %v1685_v29  ;;  %v5093_v33 = vsel %vm5009_vm4, %v1625_v18, -1e+10 }
 0x416   : > { %v1608_v34 = vpop.f32.mrb[26].mxu0  ;;  %v1688_v35 = vsel %vm1648_vm3, %v5093_v33, -inf }
 0x417   : > { %v3890_v36 = vpop.f32.mrb[27].mxu0  ;;  %1689 = vmax.xlane.f32.xlu1 %v1688_v35  ;;  %v5099_v37 = vsel %vm5005_vm2, %v1626_v31, -1e+10  ;;  %v1651_v41 = vpop.xlane.xlu0 %1650  ;;  %v1627_v51 = vmul.f32 0.17677669, %v1608_v34 }
 0x418   : > { %v1691_v39 = vsel %vm1648_vm3, %v5099_v37, -inf  ;;  %v1697_v42 = vsub.f32 %v5015_v20, %v1651_v41 }
 0x419   : > { %1692 = vmax.xlane.f32.xlu0 %v1691_v39  ;;  %v5115_v58 = vsel %vm5009_vm4, %v1627_v51, -1e+10  ;;  %v1654_v46 = vpop.xlane.xlu1 %1653 }
 0x41a   : > { %v1713_v9 = vmul.f32 1.442695, %v1697_v42  ;;  %v1694_v20 = vsel %vm1648_vm3, %v5115_v58, -inf  ;;  %v1698_v61 = vsub.f32 %v5021_v14, %v1654_v46 }
 0x41c   : > { %4272 = vpow2.f32 %v1713_v9  ;;  %v1715_v0 = vmul.f32 1.442695, %v1698_v61 }
 0x41f   : > { %v1657_v43 = vpop.xlane.xlu0 %1656 }
 0x420   : > { %v1699_v47 = vsub.f32 %v5027_v28, %v1657_v43 }
 0x422   : > { %v1717_v50 = vmul.f32 1.442695, %v1699_v47 }
 0x423   : > { %v1660_v63 = vpop.xlane.xlu0 %1659 }
 0x424   : > { %4274 = vpow2.f32 %v1717_v50  ;;  %v1700_v1 = vsub.f32 %v5033_v30, %v1660_v63 }
 0x425   : > { %4276 = vpow2.f32 %v1715_v0 }
 0x426   : > { %v5111_v52 = vpop.eup %4272  ;;  %v1719_v2 = vmul.f32 1.442695, %v1700_v1 }
 0x427   : > { %v1745_v59 = vsel %vm1648_vm3, %v5111_v52, 0.0 }
 0x428   : > { %4090 = vrot.lane.b32.xlu1 %v4937_v54, %s4530_s21  ;;  %4278 = vpow2.f32 %v1719_v2 }
 0x42c   : > { %4095 = vrot.lane.b32.xlu1 %v4944_v57, %s4531_s23 }
 0x42e   : > { %v5119_v60 = vpop.eup %4274 }
 0x42f   : > { %4085 = vrot.lane.b32.xlu0 %v4944_v57, %s4530_s21  ;;  %v1751_v28 = vsel %vm1648_vm3, %v5119_v60, 0.0  ;;  %v5129_v4 = vpop.eup %4276 }
 0x430   : > { %v1748_v5 = vsel %vm1648_vm3, %v5129_v4, 0.0 }
 0x432   : > { %v5133_v6 = vpop.eup %4278 }
 0x433   : > { %v1754_v7 = vsel %vm1648_vm3, %v5133_v6, 0.0 }
 0x44e   : > { %1746 = vadd.xlane.f32.xlu0 %v1745_v59 }
 0x450   : > { %1695 = vmax.xlane.f32.xlu1 %v1694_v20 }
 0x452   : > { %1752 = vadd.xlane.f32.xlu0 %v1751_v28 }
 0x461   : > { %4100 = vrot.lane.b32.xlu1 %v4937_v54, %s4531_s23 }
 0x485   : > { %1749 = vadd.xlane.f32.xlu1 %v1748_v5 }
 0x489   : > { %1755 = vadd.xlane.f32.xlu1 %v1754_v7 }
 0x48e   : > { %v1663_v14 = vpop.xlane.xlu0 %1662 }
 0x48f   : > { %v1701_v48 = vsub.f32 %v5039_v38, %v1663_v14 }
 0x490   : > { %v1666_v49 = vpop.xlane.xlu1 %1665 }
 0x491   : > { %v1721_v30 = vmul.f32 1.442695, %v1701_v48  ;;  %v1702_v56 = vsub.f32 %v5045_v40, %v1666_v49 }
 0x493   : > { %4280 = vpow2.f32 %v1721_v30  ;;  %v1723_v10 = vmul.f32 1.442695, %v1702_v56 }
 0x495   : > { %4282 = vpow2.f32 %v1723_v10 }
 0x496   : > { %v1669_v44 = vpop.xlane.xlu0 %1668 }
 0x497   : > { %v1703_v53 = vsub.f32 %v5051_v55, %v1669_v44 }
 0x498   : > { %v1672_v12 = vpop.xlane.xlu1 %1671 }
 0x499   : > { %v1725_v13 = vmul.f32 1.442695, %v1703_v53  ;;  %v1704_v16 = vsub.f32 %v5057_v62, %v1672_v12 }
 0x49a   : > { %v1675_v17 = vpop.xlane.xlu0 %1674 }
 0x49b   : > { %4284 = vpow2.f32 %v1725_v13  ;;  %v1727_v18 = vmul.f32 1.442695, %v1704_v16  ;;  %v1705_v23 = vsub.f32 %v5063_v3, %v1675_v17 }
 0x49c   : > { %v1678_v38 = vpop.xlane.xlu1 %1677 }
 0x49d   : > { %v5142_v27 = vpop.eup %4280  ;;  %4286 = vpow2.f32 %v1727_v18  ;;  %v1729_v40 = vmul.f32 1.442695, %v1705_v23  ;;  %v1706_v29 = vsub.f32 %v5069_v8, %v1678_v38 }
 0x49e   : > { %v1681_v31 = vpop.xlane.xlu0 %1680  ;;  %v1757_v55 = vsel %vm1648_vm3, %v5142_v27, 0.0 }
 0x49f   : > { %v5147_v32 = vpop.eup %4282  ;;  %4288 = vpow2.f32 %v1729_v40  ;;  %v1731_v62 = vmul.f32 1.442695, %v1706_v29  ;;  %v1707_v34 = vsub.f32 %v5075_v11, %v1681_v31  ;;  %1758 = vadd.xlane.f32.xlu0 %v1757_v55 }
 0x4a0   : > { %v1684_v35 = vpop.xlane.xlu1 %1683  ;;  %v1760_v3 = vsel %vm1648_vm3, %v5147_v32, 0.0 }
 0x4a1   : > { %4290 = vpow2.f32 %v1731_v62  ;;  %v1733_v36 = vmul.f32 1.442695, %v1707_v34  ;;  %v1708_v39 = vsub.f32 %v5081_v15, %v1684_v35  ;;  %1761 = vadd.xlane.f32.xlu1 %v1760_v3 }
 0x4a2   : > { %v1687_v8 = vpop.xlane.xlu0 %1686 }
 0x4a3   : > { %4292 = vpow2.f32 %v1733_v36  ;;  %v1735_v41 = vmul.f32 1.442695, %v1708_v39  ;;  %v1709_v42 = vsub.f32 %v5087_v25, %v1687_v8 }
 0x4a4   : > { %v1690_v43 = vpop.xlane.xlu1 %1689 }
 0x4a5   : > { %v5154_v9 = vpop.eup %4284  ;;  %4294 = vpow2.f32 %v1735_v41  ;;  %v1737_v11 = vmul.f32 1.442695, %v1709_v42  ;;  %v1710_v47 = vsub.f32 %v5093_v33, %v1690_v43 }
 0x4a6   : > { %v1693_v50 = vpop.xlane.xlu0 %1692  ;;  %v1763_v51 = vsel %vm1648_vm3, %v5154_v9, 0.0 }
 0x4a7   : > { %v5159_v59 = vpop.eup %4286  ;;  %4296 = vpow2.f32 %v1737_v11  ;;  %v1739_v15 = vmul.f32 1.442695, %v1710_v47  ;;  %v1711_v20 = vsub.f32 %v5099_v37, %v1693_v50  ;;  %1764 = vadd.xlane.f32.xlu0 %v1763_v51 }
 0x4a8   : > { %v1766_v25 = vsel %vm1648_vm3, %v5159_v59, 0.0  ;;  %v4091_v56 = vpop.permute.xlu1 %4090 }
 0x4a9   : > { %v5164_v28 = vpop.eup %4288  ;;  %4298 = vpow2.f32 %v1739_v15  ;;  %v1741_v46 = vmul.f32 1.442695, %v1711_v20  ;;  %1767 = vadd.xlane.f32.xlu1 %v1766_v25  ;;  %v4093_v36 = vunpack.i.h.bf16 %v4091_v56  ;;  %v4092_v39 = vunpack.i.l.bf16 %v4091_v56 }
 0x4aa   : > { %v1769_v33 = vsel %vm1648_vm3, %v5164_v28, 0.0  ;;  %v4086_v17 = vpop.permute.xlu0 %4085 }
 0x4ab   : > { %v5168_v61 = vpop.eup %4290  ;;  %4300 = vpow2.f32 %v1741_v46  ;;  %1770 = vadd.xlane.f32.xlu0 %v1769_v33  ;;  %v4088_v31 = vunpack.i.h.bf16 %v4086_v17  ;;  %v4087_v55 = vunpack.i.l.bf16 %v4086_v17 }
 0x4ac   : > { %v1772_v63 = vsel %vm1648_vm3, %v5168_v61, 0.0  ;;  %v5194_v10 = vpop.permute.xlu1 %4095 }
 0x4ad   : > { %v5172_v37 = vpop.eup %4292  ;;  %1773 = vadd.xlane.f32.xlu1 %v1772_v63  ;;  %v1222_v8 = vpack.c.bf16 %v4088_v31, %v4087_v55  ;;  %v4098_v15 = vunpack.i.h.bf16 %v5194_v10  ;;  %v4097_v20 = vunpack.i.l.bf16 %v5194_v10 }
 0x4ae   : > { %v1775_v0 = vsel %vm1648_vm3, %v5172_v37, 0.0 }
 0x4af   : > { %v5176_v1 = vpop.eup %4294  ;;  %1776 = vadd.xlane.f32.xlu0 %v1775_v0 }
 0x4b0   : > { %v1778_v2 = vsel %vm1648_vm3, %v5176_v1, 0.0 }
 0x4b1   : > { %v5180_v5 = vpop.eup %4296  ;;  %1779 = vadd.xlane.f32.xlu1 %v1778_v2  ;;  %v1224_v2 = vpack.c.bf16 %v4098_v15, %v4097_v20 }
 0x4b2   : > { %v1781_v7 = vsel %vm1648_vm3, %v5180_v5, 0.0 }
 0x4b3   : > { %v5184_v14 = vpop.eup %4298  ;;  %1782 = vadd.xlane.f32.xlu0 %v1781_v7 }
 0x4b4   : > { %v1784_v48 = vsel %vm1648_vm3, %v5184_v14, 0.0 }
 0x4b5   : > { %v5188_v49 = vpop.eup %4300  ;;  %1785 = vadd.xlane.f32.xlu1 %v1784_v48 }
 0x4b6   : > { %v1787_v30 = vsel %vm1648_vm3, %v5188_v49, 0.0 }
 0x4b7   : > { %1788 = vadd.xlane.f32.xlu0 %v1787_v30 }
 0x4cd   : > { %4105 = vrot.lane.b32.xlu0 %v4944_v57, %s4532_s15 }
 0x4db   : > { %v1747_v18 = vpop.xlane.xlu0 %1746 }
 0x4dd   : > { %v1696_v44 = vpop.xlane.xlu1 %1695 }
 0x4de   : > { %v1712_v53 = vsub.f32 %v5115_v58, %v1696_v44 }
 0x4df   : > { %v1753_v23 = vpop.xlane.xlu0 %1752 }
 0x4e0   : > { %v1743_v12 = vmul.f32 1.442695, %v1712_v53 }
 0x4e1   : > { %v5203_v57 = vpop.permute.xlu1 %4100 }
 0x4e2   : > { %4302 = vpow2.f32 %v1743_v12  ;;  %v4102_v56 = vunpack.i.l.bf16 %v5203_v57 }
 0x4e3   : > { %4304 = vrcp.f32 %v1747_v18 }
 0x4ec   : > { %v5197_v13 = vpop.eup %4302 }
 0x4ed   : > { %v1790_v16 = vsel %vm1648_vm3, %v5197_v13, 0.0  ;;  %v4305_v40 = vpop.eup %4304 }
 0x4ee   : > { %1791 = vadd.xlane.f32.xlu1 %v1790_v16  ;;  %v1809_v62 = vmul.f32 %v4305_v40, %v5111_v52  ;;  %v1223_v52 = vpack.c.bf16 %v4093_v36, %v4092_v39 }
 0x4ff   : > { %4110 = vrot.lane.b32.xlu1 %v4937_v54, %s4532_s15 }
 0x512   : > { %v1750_v38 = vpop.xlane.xlu1 %1749 }
 0x513   : > { %4306 = vrcp.f32 %v1750_v38 }
 0x514   : > { %4308 = vrcp.f32 %v1753_v23 }
 0x516   : > { %v1756_v58 = vpop.xlane.xlu1 %1755 }
 0x517   : > { %4310 = vrcp.f32 %v1756_v58 }
 0x51d   : > { %v4307_v29 = vpop.eup %4306 }
 0x51e   : > { %v1810_v34 = vmul.f32 %v4307_v29, %v5129_v4  ;;  %v4309_v54 = vpop.eup %4308 }
 0x51f   : > { %v1811_v41 = vmul.f32 %v4309_v54, %v5119_v60 }
 0x520   : > { %v1825_v35 = vpack.c.bf16 %v1810_v34, %v1809_v62 }
 0x521   : > { %v4311_v3 = vpop.eup %4310 }
 0x522   : > { %v1812_v42 = vmul.f32 %v4311_v3, %v5133_v6  ;;  %3894 = vmatmul.mubr.msk.bf16.vlgmr.msra.gmra.mrb[16].mxu1 %vm1648_vm3, %v1825_v35 }
 0x523   : > { %3904 = vmatpush3.bf16.msra.mxu1 %v1222_v8  ;;  %3905 = vmatprep.mubr.msk.bf16.mxu1 %vm4529_vm0, %v4528_v19 }
 0x524   : > { %v1826_v43 = vpack.c.bf16 %v1812_v42, %v1811_v41  ;;  %3915 = vmatprep.subr.bf16.mxu1 %v4528_v19 }
 0x526   : > { %3900 = vmatmul.mubr.msk.bf16.vlgmr.msra.gmra.mrb[28].mxu0 %vm1648_vm3, %v1826_v43 }
 0x527   : > { %3910 = vmatpush3.bf16.msra.mxu0 %v1223_v52  ;;  %3911 = vmatprep.mubr.msk.bf16.mxu0 %vm4529_vm0, %v4528_v19 }
 0x528   : > { %3921 = vmatprep.subr.bf16.mxu0 %v4528_v19 }
 0x52c   : > { %v1759_v60 = vpop.xlane.xlu0 %1758 }
 0x52d   : > { %4312 = vrcp.f32 %v1759_v60 }
 0x52e   : > { %v1762_v4 = vpop.xlane.xlu1 %1761 }
 0x52f   : > { %4314 = vrcp.f32 %v1762_v4 }
 0x534   : > { %v1765_v6 = vpop.xlane.xlu0 %1764 }
 0x535   : > { %4316 = vrcp.f32 %v1765_v6 }
 0x536   : > { %v1768_v11 = vpop.xlane.xlu1 %1767 }
 0x537   : > { %v4313_v47 = vpop.eup %4312  ;;  %4318 = vrcp.f32 %v1768_v11 }
 0x538   : > { %v1771_v50 = vpop.xlane.xlu0 %1770  ;;  %v1813_v25 = vmul.f32 %v4313_v47, %v5142_v27 }
 0x539   : > { %v4315_v51 = vpop.eup %4314  ;;  %4320 = vrcp.f32 %v1771_v50 }
 0x53a   : > { %v1814_v46 = vmul.f32 %v4315_v51, %v5147_v32  ;;  %v1774_v33 = vpop.xlane.xlu1 %1773  ;;  %v4103_v32 = vunpack.i.h.bf16 %v5203_v57 }
 0x53b   : > { %4322 = vrcp.f32 %v1774_v33 }
 0x53c   : > { %v1777_v63 = vpop.xlane.xlu0 %1776  ;;  %v1827_v0 = vpack.c.bf16 %v1814_v46, %v1813_v25  ;;  %v1225_v23 = vpack.c.bf16 %v4103_v32, %v4102_v56 }
 0x53d   : > { %4324 = vrcp.f32 %v1777_v63 }
 0x53e   : > { %3906 = vmatmul.mubr.msk.bf16.vlgmr.msra.gmra.mrb[20].mxu1 %vm1648_vm3, %v1827_v0  ;;  %v1780_v7 = vpop.xlane.xlu1 %1779 }
 0x53f   : > { %v4317_v48 = vpop.eup %4316  ;;  %4326 = vrcp.f32 %v1780_v7  ;;  %3916 = vmatpush3.bf16.msra.mxu1 %v1224_v2  ;;  %3917 = vmatprep.mubr.msk.bf16.mxu1 %vm4529_vm0, %v4528_v19 }
 0x540   : > { %v1783_v30 = vpop.xlane.xlu0 %1782  ;;  %3927 = vmatprep.subr.bf16.mxu1 %v4528_v19  ;;  %v1815_v10 = vmul.f32 %v4317_v48, %v5154_v9 }
 0x541   : > { %v4319_v27 = vpop.eup %4318  ;;  %4328 = vrcp.f32 %v1783_v30 }
 0x542   : > { %v1816_v44 = vmul.f32 %v4319_v27, %v5159_v59  ;;  %v1786_v53 = vpop.xlane.xlu1 %1785 }
 0x543   : > { %v4321_v12 = vpop.eup %4320  ;;  %4330 = vrcp.f32 %v1786_v53  ;;  %v4177_v53 = vld [vmem:[%s4809_s16 + $0x8] sm:$0xff]  }
 0x544   : > { %v1789_v16 = vpop.xlane.xlu0 %1788  ;;  %v1828_v17 = vpack.c.bf16 %v1816_v44, %v1815_v10  ;;  %v1817_v38 = vmul.f32 %v4321_v12, %v5164_v28  ;;  %v4176_v44 = vld [vmem:[%s4809_s16] sm:$0xff]  }
 0x545   : > { %v4323_v18 = vpop.eup %4322  ;;  %4332 = vrcp.f32 %v1789_v16 }
 0x546   : > { %v1818_v58 = vmul.f32 %v4323_v18, %v5168_v61  ;;  %3912 = vmatmul.mubr.msk.bf16.vlgmr.msra.gmra.mrb[32].mxu0 %vm1648_vm3, %v1828_v17 }
 0x547   : > { %v4325_v40 = vpop.eup %4324  ;;  %3922 = vmatpush3.bf16.msra.mxu0 %v1225_v23  ;;  %3923 = vmatprep.mubr.msk.bf16.mxu0 %vm4529_vm0, %v4528_v19 }
 0x548   : > { %v4106_v9 = vpop.permute.xlu0 %4105  ;;  %v1829_v59 = vpack.c.bf16 %v1818_v58, %v1817_v38  ;;  %3933 = vmatprep.subr.bf16.mxu0 %v4528_v19  ;;  %v1819_v55 = vmul.f32 %v4325_v40, %v5172_v37  ;;  %v4178_v38 = vld [vmem:[%s4809_s16 + $0x10] sm:$0xff]  }
 0x549   : > { %v4327_v57 = vpop.eup %4326  ;;  %v4108_v29 = vunpack.i.h.bf16 %v4106_v9  ;;  %v4107_v31 = vunpack.i.l.bf16 %v4106_v9 }
 0x54a   : > { %v1820_v28 = vmul.f32 %v4327_v57, %v5176_v1  ;;  %3918 = vmatmul.mubr.msk.bf16.vlgmr.msra.gmra.mrb[24].mxu1 %vm1648_vm3, %v1829_v59  ;;  %v4179_v59 = vld [vmem:[%s4809_s16 + $0x18] sm:$0xff]   ;;  %v4180_v57 = vld [vmem:[%s4809_s16 + $0x20] sm:$0xff]  }
 0x54b   : > { %v4329_v61 = vpop.eup %4328  ;;  %v1226_v62 = vpack.c.bf16 %v4108_v29, %v4107_v31  ;;  %3929 = vmatprep.mubr.msk.bf16.mxu1 %vm4529_vm0, %v4528_v19  ;;  %v4181_v29 = vld [vmem:[%s4809_s16 + $0x28] sm:$0xff]   ;;  %v4182_v31 = vld [vmem:[%s4809_s16 + $0x30] sm:$0xff]  }
 0x54c   : > { %v1830_v34 = vpack.c.bf16 %v1820_v28, %v1819_v55  ;;  %v1821_v35 = vmul.f32 %v4329_v61, %v5180_v5  ;;  %v4183_v55 = vld [vmem:[%s4809_s16 + $0x38] sm:$0xff]  }
 0x54d   : > { %v4331_v54 = vpop.eup %4330  ;;  %3928 = vmatpush3.bf16.msra.mxu1 %v1226_v62 }
 0x54e   : > { %v1822_v3 = vmul.f32 %v4331_v54, %v5184_v14  ;;  %3924 = vmatmul.mubr.msk.bf16.vlgmr.msra.gmra.mrb[36].mxu0 %vm1648_vm3, %v1830_v34  ;;  %3939 = vmatprep.subr.bf16.mxu1 %v4176_v44 }
 0x54f   : > { %3935 = vmatprep.mubr.msk.bf16.mxu0 %vm4529_vm0, %v4528_v19  ;;  %v4333_v42 = vpop.eup %4332 }
 0x550   : > { %v1831_v37 = vpack.c.bf16 %v1822_v3, %v1821_v35  ;;  %v1823_v14 = vmul.f32 %v4333_v42, %v5188_v49 }
 0x552   : > { %3930 = vmatmul.mubr.msk.bf16.vlgmr.msra.gmra.mrb[28].mxu1 %vm1648_vm3, %v1831_v37 }
 0x553   : > { %3940 = vmatpush3.bf16.msra.mxu1 %v4176_v44 }
 0x554   : > { %3941 = vmatprep.subr.bf16.mxu1 %v4177_v53 }
 0x557   : > { %3942 = vmatpush3.bf16.msra.mxu1 %v4177_v53  ;;  %v4376_v53 = vld [vmem:[#allocation2] sm:$0xff] }
 0x558   : > { %3943 = vmatprep.subr.bf16.mxu1 %v4178_v38 }
 0x55b   : > { %3944 = vmatpush3.bf16.msra.mxu1 %v4178_v38 }
 0x55c   : > { %3945 = vmatprep.subr.bf16.mxu1 %v4179_v59 }
 0x55f   : > { %3946 = vmatpush3.bf16.msra.mxu1 %v4179_v59  ;;  %v4184_v59 = vld [vmem:[%s4786_s20] ss:$16 sps:$4 sm:$0xff]  }
 0x560   : > { %3947 = vmatprep.subr.bf16.mxu1 %v4180_v57 }
 0x563   : > { %3948 = vmatpush3.bf16.msra.mxu1 %v4180_v57  ;;  %v4186_v57 = vld [vmem:[%s4786_s20 + $0x4] ss:$16 sps:$4 sm:$0xff]  }
 0x564   : > { %3949 = vmatprep.subr.bf16.mxu1 %v4181_v29 }
 0x567   : > { %3950 = vmatpush3.bf16.msra.mxu1 %v4181_v29  ;;  %v4187_v29 = vld [vmem:[%s4786_s20 + $0x8] ss:$16 sps:$4 sm:$0xff]  }
 0x568   : > { %3951 = vmatprep.subr.bf16.mxu1 %v4182_v31 }
 0x56b   : > { %3952 = vmatpush3.bf16.msra.mxu1 %v4182_v31  ;;  %v4189_v31 = vld [vmem:[%s4786_s20 + $0xc] ss:$16 sps:$4 sm:$0xff]  }
 0x56c   : > { %3953 = vmatprep.subr.bf16.mxu1 %v4183_v55 }
 0x56f   : > { %3954 = vmatpush3.bf16.msra.mxu1 %v4183_v55  ;;  %v4192_v55 = vld [vmem:[%s4786_s20 + $0x24] ss:$16 sps:$4 sm:$0xff]  }
 0x570   : > { %2708 = vmatprep.subr.bf16.mxu1 %v4189_v31 }
 0x57b   : > { %v1792_v1 = vpop.xlane.xlu1 %1791 }
 0x57c   : > { %4334 = vrcp.f32 %v1792_v1 }
 0x57f   : > { %v4111_v36 = vpop.permute.xlu1 %4110 }
 0x580   : > { %v4113_v39 = vunpack.i.h.bf16 %v4111_v36  ;;  %v4112_v8 = vunpack.i.l.bf16 %v4111_v36 }
 0x582   : > { %v1227_v41 = vpack.c.bf16 %v4113_v39, %v4112_v8 }
 0x584   : > { %3934 = vmatpush3.bf16.msra.mxu0 %v1227_v41 }
 0x585   : > { %2655 = vmatprep.subr.bf16.mxu0 %v4186_v57 }
 0x586   : > { %v4335_v5 = vpop.eup %4334 }
 0x587   : > { %v1824_v43 = vmul.f32 %v4335_v5, %v5197_v13 }
 0x589   : > { %v1832_v52 = vpack.c.bf16 %v1824_v43, %v1823_v14 }
 0x58b   : > { %3936 = vmatmul.mubr.msk.bf16.vlgmr.msra.gmra.mrb[40].mxu0 %vm1648_vm3, %v1832_v52 }
 0x58c   : > { %2687 = vmatprep.mubr.bf16.mxu0 %v4527_v45  ;;  %2656 = vmatpush1.bf16.msra.mxu0 %v4184_v59 }
 0x58d   : > { %2657 = vmatprep.subr.bf16.mxu0 %v4192_v55 }
 0x5f5   : > { %v5250_v19 = vpop.f32.mrb[16].mxu1 }
 0x5f6   : > { %v3895_v60 = vpop.f32.mrb[17].mxu1 }
 0x5f7   : > { %v5252_v4 = vpop.f32.mrb[18].mxu1 }
 0x5f8   : > { %v3896_v6 = vpop.f32.mrb[19].mxu1 }
 0x5f9   : > { %v5254_v11 = vpop.f32.mrb[28].mxu0 }
 0x5fa   : > { %v3901_v47 = vpop.f32.mrb[29].mxu0 }
 0x5fb   : > { %v5256_v50 = vpop.f32.mrb[30].mxu0 }
 0x5fc   : > { %v3902_v51 = vpop.f32.mrb[31].mxu0 }
 0x611   : > { %v1958_v49 = vpop.f32.mrb[20].mxu1 }
 0x612   : > { %v3907_v15 = vpop.f32.mrb[21].mxu1 }
 0x613   : > { %v1961_v13 = vpop.f32.mrb[22].mxu1 }
 0x614   : > { %v4114_v20 = vpack.i.bf16 %v1961_v13, %v1958_v49  ;;  %v3908_v25 = vpop.f32.mrb[23].mxu1 }
 0x616   : > { %4115 = vrot.lane.b32.xlu0 %v4114_v20, %s4532_s15 }
 0x619   : > { %v2002_v46 = vpop.f32.mrb[32].mxu0 }
 0x61a   : > { %v3913_v33 = vpop.f32.mrb[33].mxu0 }
 0x61b   : > { %v2005_v63 = vpop.f32.mrb[34].mxu0 }
 0x61c   : > { %v4119_v0 = vpack.i.bf16 %v2005_v63, %v2002_v46  ;;  %v3914_v2 = vpop.f32.mrb[35].mxu0 }
 0x61d   : > { %v2046_v7 = vpop.f32.mrb[24].mxu1 }
 0x61e   : > { %4120 = vrot.lane.b32.xlu1 %v4119_v0, %s4532_s15  ;;  %v3919_v48 = vpop.f32.mrb[25].mxu1 }
 0x61f   : > { %v2049_v30 = vpop.f32.mrb[26].mxu1 }
 0x620   : > { %v4124_v27 = vpack.i.bf16 %v2049_v30, %v2046_v7  ;;  %v3920_v32 = vpop.f32.mrb[27].mxu1 }
 0x621   : > { %v2090_v56 = vpop.f32.mrb[36].mxu0 }
 0x622   : > { %v3925_v10 = vpop.f32.mrb[37].mxu0  ;;  %4125 = vrot.lane.b32.xlu0 %v4124_v27, %s4531_s23 }
 0x623   : > { %v2093_v12 = vpop.f32.mrb[38].mxu0 }
 0x624   : > { %v4129_v16 = vpack.i.bf16 %v2093_v12, %v2090_v56  ;;  %v3926_v17 = vpop.f32.mrb[39].mxu0 }
 0x625   : > { %v2134_v18 = vpop.f32.mrb[28].mxu1  ;;  %v4377_v17 = vld [vmem:[#allocation2 + $0x8] sm:$0xff] }
 0x626   : > { %4130 = vrot.lane.b32.xlu1 %v4129_v16, %s4531_s23  ;;  %v3931_v23 = vpop.f32.mrb[29].mxu1 }
 0x627   : > { %v2137_v58 = vpop.f32.mrb[30].mxu1  ;;  %v4378_v23 = vld [vmem:[#allocation2 + $0x10] sm:$0xff] }
 0x628   : > { %v4134_v40 = vpack.i.bf16 %v2137_v58, %v2134_v18  ;;  %v3932_v9 = vpop.f32.mrb[31].mxu1 }
 0x62a   : > { %4135 = vrot.lane.b32.xlu0 %v4134_v40, %s4530_s21  ;;  %v4379_v40 = vld [vmem:[#allocation2 + $0x18] sm:$0xff] }
 0x65e   : > { %v2178_v28 = vpop.f32.mrb[40].mxu0 }
 0x65f   : > { %v3937_v61 = vpop.f32.mrb[41].mxu0 }
 0x660   : > { %v2181_v62 = vpop.f32.mrb[42].mxu0  ;;  %v4190_v61 = vld [vmem:[%s4786_s20 + $0x20] ss:$16 sps:$4 sm:$0xff]  }
 0x661   : > { %v4139_v34 = vpack.i.bf16 %v2181_v62, %v2178_v28  ;;  %v3938_v54 = vpop.f32.mrb[43].mxu0  ;;  %v4195_v28 = vld [vmem:[%s4786_s20 + $0x2c] ss:$16 sps:$4 sm:$0xff]   ;;  %v4193_v62 = vld [vmem:[%s4786_s20 + $0x28] ss:$16 sps:$4 sm:$0xff]   ;;  %2658 = vmatpush1.bf16.msra.mxu0 %v4190_v61 }
 0x662   : > { %v3612_v61 = vld [vmem:[%s5628_s17] ss:$0 sm:$0xff] }
 0x663   : > { %4140 = vrot.lane.b32.xlu1 %v4139_v34, %s4530_s21  ;;  %s5632_s21 = sld [smem:[#allocation21_spill]] (!%p3679_p7) }
 0x669   : > { %s5633_s23 = smov (!%p3679_p7), %s5632_s21 }
 0x688   : > { %v4116_v35 = vpop.permute.xlu0 %4115 }
 0x689   : > { %v4118_v37 = vunpack.i.h.bf16 %v4116_v35  ;;  %v4117_v1 = vunpack.i.l.bf16 %v4116_v35 }
 0x68b   : > { %v2234_v41 = vsel %vm1235_vm1, %v5252_v4, %v4118_v37  ;;  %v2233_v42 = vsel %vm1235_vm1, %v5250_v19, %v4117_v1 }
 0x690   : > { %v4121_v51 = vpop.permute.xlu1 %4120 }
 0x691   : > { %v4123_v15 = vunpack.i.h.bf16 %v4121_v51  ;;  %v4122_v4 = vunpack.i.l.bf16 %v4121_v51  ;;  %v4196_v51 = vld [vmem:[%s4786_s20 + $0x40] ss:$16 sps:$4 sm:$0xff]  }
 0x693   : > { %v2236_v25 = vsel %vm1235_vm1, %v5256_v50, %v4123_v15  ;;  %v2235_v46 = vsel %vm1235_vm1, %v5254_v11, %v4122_v4  ;;  %v3603_v50 = vld [vmem:[%s5627_s2] ss:$0 sm:$0xff]  ;;  %v4204_v15 = vld [vmem:[%s4786_s20 + $0x64] ss:$16 sps:$4 sm:$0xff]   ;;  %v4207_v4 = vld [vmem:[%s4786_s20 + $0x6c] ss:$16 sps:$4 sm:$0xff]  }
 0x694   : > { %v4126_v3 = vpop.permute.xlu0 %4125 }
 0x695   : > { %v4128_v36 = vunpack.i.h.bf16 %v4126_v3  ;;  %v4127_v39 = vunpack.i.l.bf16 %v4126_v3 }
 0x697   : > { %v2239_v43 = vsel %vm2237_vm5, %v2234_v41, %v4128_v36  ;;  %v2238_v52 = vsel %vm2237_vm5, %v2233_v42, %v4127_v39 }
 0x698   : > { %v4131_v49 = vpop.permute.xlu1 %4130 }
 0x699   : > { %v4133_v13 = vunpack.i.h.bf16 %v4131_v49  ;;  %v4132_v20 = vunpack.i.l.bf16 %v4131_v49  ;;  %v4199_v49 = vld [vmem:[%s4786_s20 + $0x48] ss:$16 sps:$4 sm:$0xff]  }
 0x69b   : > { %v2241_v0 = vsel %vm2237_vm5, %v2236_v25, %v4133_v13  ;;  %v2240_v2 = vsel %vm2237_vm5, %v2235_v46, %v4132_v20  ;;  %v4202_v13 = vld [vmem:[%s4786_s20 + $0x60] ss:$16 sps:$4 sm:$0xff]   ;;  %v4205_v20 = vld [vmem:[%s4786_s20 + $0x68] ss:$16 sps:$4 sm:$0xff]   ;;  %v4213_v25 = vld [vmem:[%s4786_s20 + $0x8c] ss:$16 sps:$4 sm:$0xff]  }
 0x69c   : > { %v4136_v8 = vpop.permute.xlu0 %4135  ;;  %v4208_v46 = vld [vmem:[%s4786_s20 + $0x80] ss:$16 sps:$4 sm:$0xff]  }
 0x69d   : > { %v4138_v5 = vunpack.i.h.bf16 %v4136_v8  ;;  %v4137_v14 = vunpack.i.l.bf16 %v4136_v8 }
 0x69f   : > { %v2243_v60 = vsel %vm2242_vm6, %v2238_v52, %v4137_v14  ;;  %v2244_v6 = vsel %vm2242_vm6, %v2239_v43, %v4138_v5 }
 0x6a0   : > { %v2247_v47 = vpack.c.bf16 %v2244_v6, %v2243_v60  ;;  %v4198_v6 = vld [vmem:[%s4786_s20 + $0x44] ss:$16 sps:$4 sm:$0xff]  }
 0x6a1   : > { %2659 = vmatprep.subr.bf16.mxu0 %v4198_v6 }
 0x6a2   : > { %3955 = vmatprep.mubr.bf16.mxu1 %v2247_v47  ;;  %v4201_v47 = vld [vmem:[%s4786_s20 + $0x4c] ss:$16 sps:$4 sm:$0xff]   ;;  %2660 = vmatpush1.bf16.msra.mxu0 %v4196_v51  ;;  %v4233_v51 = vld [vmem:[%s4838_s25 + $0xc0] sm:$0xff]  }
 0x6a3   : > { %2661 = vmatprep.subr.bf16.mxu0 %v4204_v15  ;;  %v4235_v15 = vld [vmem:[%s4838_s25 + $0x80] sm:$0xff]  }
 0x6a6   : > { %2662 = vmatpush1.bf16.msra.mxu0 %v4202_v13  ;;  %v4238_v13 = vld [vmem:[%s4838_s25 + $0x8] sm:$0xff]  }
 0x6d5   : > { %v4141_v19 = vpop.permute.xlu1 %4140 }
 0x6d6   : > { %v4143_v33 = vunpack.i.h.bf16 %v4141_v19  ;;  %v4142_v63 = vunpack.i.l.bf16 %v4141_v19  ;;  %v4210_v19 = vld [vmem:[%s4786_s20 + $0x84] ss:$16 sps:$4 sm:$0xff]  }
 0x6d7   : > { %2663 = vmatprep.subr.bf16.mxu0 %v4210_v19  ;;  %v4240_v19 = vld [vmem:[%s4838_s25 + $0x50] sm:$0xff]  }
 0x6d8   : > { %v2246_v7 = vsel %vm2242_vm6, %v2241_v0, %v4143_v33  ;;  %v2245_v48 = vsel %vm2242_vm6, %v2240_v2, %v4142_v63  ;;  %v4211_v33 = vld [vmem:[%s4786_s20 + $0x88] ss:$16 sps:$4 sm:$0xff]   ;;  %2664 = vmatpush1.bf16.msra.mxu0 %v4208_v46  ;;  %v4216_v63 = vld [vmem:[%s4786_s20 + $0xa4] ss:$16 sps:$4 sm:$0xff]   ;;  %v4219_v0 = vld [vmem:[%s4786_s20 + $0xac] ss:$16 sps:$4 sm:$0xff]  }
 0x6d9   : > { %v2248_v30 = vpack.c.bf16 %v2246_v7, %v2245_v48  ;;  %v4214_v2 = vld [vmem:[%s4786_s20 + $0xa0] ss:$16 sps:$4 sm:$0xff]   ;;  %v4217_v7 = vld [vmem:[%s4786_s20 + $0xa8] ss:$16 sps:$4 sm:$0xff]   ;;  %2665 = vmatprep.subr.bf16.mxu0 %v4216_v63 }
 0x6da   : > { %v4220_v48 = vld [vmem:[%s4786_s20 + $0xc0] ss:$16 sps:$4 sm:$0xff]   ;;  %v4244_v63 = vld [vmem:[%s4838_s25 + $0x58] sm:$0xff]  }
 0x6db   : > { %3956 = vmatmul.mubr.bf16.vlgmr.msra.gmra.mrb[32].mxu1 %v2248_v30  ;;  %v4222_v30 = vld [vmem:[%s4786_s20 + $0xc4] ss:$16 sps:$4 sm:$0xff]  }
 0x6dc   : > { %2740 = vmatprep.mubr.bf16.mxu1 %v4527_v45  ;;  %2709 = vmatpush1.bf16.msra.mxu1 %v4187_v29  ;;  %v4242_v46 = vld [vmem:[%s4838_s25 + $0x10] sm:$0xff]  }
 0x6dd   : > { %2710 = vmatprep.subr.bf16.mxu1 %v4195_v28  ;;  %2666 = vmatpush1.bf16.msra.mxu0 %v4214_v2  ;;  %v4246_v2 = vld [vmem:[%s4838_s25 + $0x18] sm:$0xff]  }
 0x6de   : > { %2667 = vmatprep.subr.bf16.mxu0 %v4222_v30  ;;  %v4249_v30 = vld [vmem:[%s4838_s25 + $0xe0] sm:$0xff]  }
 0x6e0   : > { %2711 = vmatpush1.bf16.msra.mxu1 %v4193_v62 }
 0x6e1   : > { %2712 = vmatprep.subr.bf16.mxu1 %v4201_v47  ;;  %2668 = vmatpush1.bf16.msra.mxu0 %v4220_v48  ;;  %v4248_v48 = vld [vmem:[%s4838_s25 + $0x60] sm:$0xff]  }
 0x6e4   : > { %2713 = vmatpush1.bf16.msra.mxu1 %v4199_v49  ;;  %v4234_v49 = vld [vmem:[%s4838_s25] sm:$0xff]  }
 0x6e5   : > { %2714 = vmatprep.subr.bf16.mxu1 %v4207_v4  ;;  %v4237_v4 = vld [vmem:[%s4838_s25 + $0xc8] sm:$0xff]  }
 0x6e8   : > { %2715 = vmatpush1.bf16.msra.mxu1 %v4205_v20  ;;  %v4239_v20 = vld [vmem:[%s4838_s25 + $0x88] sm:$0xff]  }
 0x6e9   : > { %2716 = vmatprep.subr.bf16.mxu1 %v4213_v25  ;;  %v4241_v25 = vld [vmem:[%s4838_s25 + $0xd0] sm:$0xff]  }
 0x6ec   : > { %2717 = vmatpush1.bf16.msra.mxu1 %v4211_v33  ;;  %v4243_v33 = vld [vmem:[%s4838_s25 + $0x90] sm:$0xff]  }
 0x6ed   : > { %2718 = vmatprep.subr.bf16.mxu1 %v4219_v0  ;;  %v4245_v0 = vld [vmem:[%s4838_s25 + $0xd8] sm:$0xff]  }
 0x6f0   : > { %2719 = vmatpush1.bf16.msra.mxu1 %v4217_v7  ;;  %v4247_v7 = vld [vmem:[%s4838_s25 + $0x98] sm:$0xff]  }
 0x7ae   : > { %v3957_v11 = vpop.f32.mrb[32].mxu1 }
 0x7af   : > { %v2354_v27 = vpop.f32.mrb[33].mxu1  ;;  %v2363_v44 = vadd.f32 %v3957_v11, %v3603_v50  ;;  %v4225_v11 = vld [vmem:[%s4786_s20 + $0xcc] ss:$16 sps:$4 sm:$0xff]  }
 0x7b0   : > { %v2355_v32 = vadd.f32 %v3603_v50, %v2354_v27  ;;  %v3958_v56 = vpop.f32.mrb[34].mxu1  ;;  %v4228_v27 = vld [vmem:[%s4786_s20 + $0xe4] ss:$16 sps:$4 sm:$0xff]   ;;  %2720 = vmatprep.subr.bf16.mxu1 %v4225_v11 }
 0x7b1   : > { %v2357_v10 = vpop.f32.mrb[35].mxu1  ;;  %v5299_v38 = vadd.f32 %v4378_v23, %v2363_v44  ;;  %v2366_v58 = vadd.f32 %v3958_v56, %v3603_v50  ;;  %v4226_v56 = vld [vmem:[%s4786_s20 + $0xe0] ss:$16 sps:$4 sm:$0xff]   ;;  %2669 = vmatprep.subr.bf16.mxu0 %v4228_v27  ;;  %v4252_v27 = vld [vmem:[%s4838_s25 + $0x68] sm:$0xff]  }
 0x7b2   : > { %v5294_v12 = vadd.f32 %v4376_v53, %v2355_v32  ;;  %v2358_v16 = vadd.f32 %v3603_v50, %v2357_v10  ;;  %v4223_v50 = vld [vmem:[%s4786_s20 + $0xc8] ss:$16 sps:$4 sm:$0xff]   ;;  %v4231_v32 = vld [vmem:[%s4786_s20 + $0xec] ss:$16 sps:$4 sm:$0xff]   ;;  %2670 = vmatpush1.bf16.msra.mxu0 %v4226_v56  ;;  %v4251_v11 = vld [vmem:[%s4838_s25 + $0xa0] sm:$0xff]  }
 0x7b3   : > { %v5303_v9 = vadd.f32 %v4379_v40, %v2366_v58  ;;  %2721 = vmatpush1.bf16.msra.mxu1 %v4223_v50  ;;  %v4229_v10 = vld [vmem:[%s4786_s20 + $0xe8] ss:$16 sps:$4 sm:$0xff]   ;;  %v4250_v50 = vld [vmem:[%s4838_s25 + $0x20] sm:$0xff]  }
 0x7b4   : > { %v5296_v18 = vadd.f32 %v4377_v17, %v2358_v16  ;;  %2375 = vadd.xlane.f32.xlu0 %v5294_v12  ;;  %2722 = vmatprep.subr.bf16.mxu1 %v4231_v32  ;;  %v4253_v32 = vld [vmem:[%s4838_s25 + $0xe8] sm:$0xff]  }
 0x7b5   : > { %v4254_v56 = vld [vmem:[%s4838_s25 + $0x28] sm:$0xff]  }
 0x7b6   : > { %2377 = vadd.xlane.f32.xlu1 %v5296_v18 }
 0x7b7   : > { %2723 = vmatpush1.bf16.msra.mxu1 %v4229_v10  ;;  %v4255_v10 = vld [vmem:[%s4838_s25 + $0xa8] sm:$0xff]  }
 0x7b8   : > { %2379 = vadd.xlane.f32.xlu0 %v5299_v38  ;;  %3795 = vmatprep.subr.bf16.mxu1 %v4233_v51 }
 0x7bc   : > { %2381 = vadd.xlane.f32.xlu0 %v5303_v9 }
 0x841   : > { %v2376_v34 = vpop.xlane.xlu0 %2375 }
 0x842   : > { %v2383_v54 = vmul.f32 0.0078125, %v2376_v34 }
 0x843   : > { %v2378_v35 = vpop.xlane.xlu1 %2377 }
 0x844   : > { %v5315_v3 = vsub.f32 %v5294_v12, %v2383_v54  ;;  %v2384_v37 = vmul.f32 0.0078125, %v2378_v35 }
 0x845   : > { %v2380_v1 = vpop.xlane.xlu0 %2379 }
 0x846   : > { %v5318_v36 = vsub.f32 %v5296_v18, %v2384_v37  ;;  %v2385_v39 = vmul.f32 0.0078125, %v2380_v1  ;;  %v2391_v8 = vmul.f32 %v5315_v3, %v5315_v3  ;;  %v3613_v1 = vld [vmem:[%s707_s13] ss:$0 sm:$0xff] }
 0x848   : > { %v5323_v41 = vsub.f32 %v5299_v38, %v2385_v39  ;;  %2395 = vadd.xlane.f32.xlu0 %v2391_v8  ;;  %v2392_v42 = vmul.f32 %v5318_v36, %v5318_v36 }
 0x849   : > { %v2382_v5 = vpop.xlane.xlu0 %2381 }
 0x84a   : > { %v2386_v14 = vmul.f32 0.0078125, %v2382_v5  ;;  %2397 = vadd.xlane.f32.xlu1 %v2392_v42  ;;  %v2393_v43 = vmul.f32 %v5323_v41, %v5323_v41 }
 0x84c   : > { %v5330_v52 = vsub.f32 %v5303_v9, %v2386_v14  ;;  %2399 = vadd.xlane.f32.xlu0 %v2393_v43 }
 0x84e   : > { %v2394_v60 = vmul.f32 %v5330_v52, %v5330_v52 }
 0x850   : > { %2401 = vadd.xlane.f32.xlu1 %v2394_v60 }
 0x8d5   : > { %v2396_v44 = vpop.xlane.xlu0 %2395 }
 0x8d6   : > { %v2403_v53 = vmul.f32 0.0078125, %v2396_v44  ;;  %v4256_v44 = vld [vmem:[%s4838_s25 + $0x70] sm:$0xff]  }
 0x8d7   : > { %v2398_v16 = vpop.xlane.xlu1 %2397 }
 0x8d8   : > { %v2407_v17 = vadd.f32 1e-05, %v2403_v53  ;;  %v2404_v23 = vmul.f32 0.0078125, %v2398_v16  ;;  %v4257_v53 = vld [vmem:[%s4838_s25 + $0xf0] sm:$0xff]  }
 0x8d9   : > { %v2400_v58 = vpop.xlane.xlu0 %2399  ;;  %v4258_v16 = vld [vmem:[%s4838_s25 + $0x30] sm:$0xff]  }
 0x8da   : > { %4336 = vrsqrt.f32 %v2407_v17  ;;  %v2408_v40 = vadd.f32 1e-05, %v2404_v23  ;;  %v2405_v59 = vmul.f32 0.0078125, %v2400_v58  ;;  %v4259_v17 = vld [vmem:[%s4838_s25 + $0xb0] sm:$0xff]   ;;  %v4260_v23 = vld [vmem:[%s4838_s25 + $0x78] sm:$0xff]  }
 0x8db   : > { %v4261_v58 = vld [vmem:[%s4838_s25 + $0xf8] sm:$0xff]  }
 0x8dc   : > { %4338 = vrsqrt.f32 %v2408_v40  ;;  %v2409_v57 = vadd.f32 1e-05, %v2405_v59  ;;  %v4262_v40 = vld [vmem:[%s4838_s25 + $0x38] sm:$0xff]  }
 0x8dd   : > { %v2402_v29 = vpop.xlane.xlu1 %2401  ;;  %v4263_v59 = vld [vmem:[%s4838_s25 + $0xb8] sm:$0xff]  }
 0x8de   : > { %4340 = vrsqrt.f32 %v2409_v57  ;;  %v2406_v31 = vmul.f32 0.0078125, %v2402_v29  ;;  %v2473_v57 = vld [vmem:[%s4832_s7] sm:$0xf] }
 0x8df   : > { %v5409_v29 = vrot.slane %v2473_v57, %v841_v22 }
 0x8e0   : > { %v2410_v55 = vadd.f32 1e-05, %v2406_v31  ;;  %v5413_v31 = vrot.slane %v2473_v57, %v849_v26 }
 0x8e2   : > { %4342 = vrsqrt.f32 %v2410_v55  ;;  %v2489_v55 = vsub.s32 3, %v4910_v21 }
 0x8e4   : > { %v4337_v28 = vpop.eup %4336  ;;  %v5422_v22 = vrot.slane %v2473_v57, %v2489_v55 }
 0x8e5   : > { %v2415_v62 = vmul.f32 %v4337_v28, %v5315_v3 }
 0x8e6   : > { %v4339_v34 = vpop.eup %4338 }
 0x8e7   : > { %v2416_v54 = vmul.f32 %v4339_v34, %v5318_v36  ;;  %v2425_v35 = vmul.f32 %v3612_v61, %v2415_v62  ;;  %v5418_v62 = vrot.slane %v2473_v57, %v845_v24 }
 0x8e8   : > { %v4341_v37 = vpop.eup %4340 }
 0x8e9   : > { %v2426_v39 = vmul.f32 %v3612_v61, %v2416_v54  ;;  %v2435_v8 = vadd.f32 %v3613_v1, %v2425_v35  ;;  %v2417_v5 = vmul.f32 %v4341_v37, %v5323_v41 }
 0x8eb   : > { %v2436_v42 = vadd.f32 %v3613_v1, %v2426_v39  ;;  %v2427_v36 = vmul.f32 %v3612_v61, %v2417_v5 }
 0x8ec   : > { %v4343_v14 = vpop.eup %4342 }
 0x8ed   : > { %v2439_v43 = vpack.c.bf16 %v2436_v42, %v2435_v8  ;;  %v2418_v3 = vmul.f32 %v4343_v14, %v5330_v52  ;;  %v2437_v41 = vadd.f32 %v3613_v1, %v2427_v36  ;;  %v4232_v52 = vld [vmem:[%s4838_s25 + $0x40] sm:$0xff]  }
 0x8ee   : > { %3767 = vmatprep.subr.bf16.mxu0 %v4232_v52 }
 0x8ef   : > { %2688 = vmatmul.mubr.bf16.vlgmr.msra.gmra.mrb[44].mxu0 %v2439_v43  ;;  %2741 = vmatmul.mubr.bf16.vlgmr.msra.gmra.mrb[36].mxu1 %v2439_v43  ;;  %v2428_v60 = vmul.f32 %v3612_v61, %v2418_v3 }
 0x8f0   : > { %2697 = vmatprep.mubr.bf16.mxu0 %v4527_v45  ;;  %2750 = vmatprep.mubr.bf16.mxu1 %v4527_v45  ;;  %v4236_v45 = vld [vmem:[%s4838_s25 + $0x48] sm:$0xff]  }
 0x8f1   : > { %v2438_v6 = vadd.f32 %v3613_v1, %v2428_v60  ;;  %3768 = vmatpush3.bf16.msra.mxu0 %v4234_v49  ;;  %3796 = vmatpush3.bf16.msra.mxu1 %v4235_v15 }
 0x8f2   : > { %3769 = vmatprep.subr.bf16.mxu0 %v4236_v45  ;;  %3797 = vmatprep.subr.bf16.mxu1 %v4237_v4 }
 0x8f3   : > { %v2440_v47 = vpack.c.bf16 %v2438_v6, %v2437_v41 }
 0x8f5   : > { %3770 = vmatpush3.bf16.msra.mxu0 %v4238_v13  ;;  %3798 = vmatpush3.bf16.msra.mxu1 %v4239_v20 }
 0x8f6   : > { %3771 = vmatprep.subr.bf16.mxu0 %v4240_v19  ;;  %3799 = vmatprep.subr.bf16.mxu1 %v4241_v25 }
 0x8f7   : > { %2698 = vmatmul.mubr.bf16.gmra.mrb[48].mxu0 %v2440_v47  ;;  %2751 = vmatmul.mubr.bf16.gmra.mrb[40].mxu1 %v2440_v47 }
 0x8f9   : > { %3772 = vmatpush3.bf16.msra.mxu0 %v4242_v46  ;;  %3800 = vmatpush3.bf16.msra.mxu1 %v4243_v33 }
 0x8fa   : > { %3773 = vmatprep.subr.bf16.mxu0 %v4244_v63  ;;  %3801 = vmatprep.subr.bf16.mxu1 %v4245_v0 }
 0x8fd   : > { %3774 = vmatpush3.bf16.msra.mxu0 %v4246_v2  ;;  %3802 = vmatpush3.bf16.msra.mxu1 %v4247_v7 }
 0x8fe   : > { %3775 = vmatprep.subr.bf16.mxu0 %v4248_v48  ;;  %3803 = vmatprep.subr.bf16.mxu1 %v4249_v30 }
 0x901   : > { %3776 = vmatpush3.bf16.msra.mxu0 %v4250_v50  ;;  %3804 = vmatpush3.bf16.msra.mxu1 %v4251_v11 }
 0x902   : > { %3777 = vmatprep.subr.bf16.mxu0 %v4252_v27  ;;  %3805 = vmatprep.subr.bf16.mxu1 %v4253_v32 }
 0x905   : > { %3778 = vmatpush3.bf16.msra.mxu0 %v4254_v56  ;;  %3806 = vmatpush3.bf16.msra.mxu1 %v4255_v10 }
 0x906   : > { %3779 = vmatprep.subr.bf16.mxu0 %v4256_v44  ;;  %3807 = vmatprep.subr.bf16.mxu1 %v4257_v53 }
 0x909   : > { %3780 = vmatpush3.bf16.msra.mxu0 %v4258_v16  ;;  %3808 = vmatpush3.bf16.msra.mxu1 %v4259_v17 }
 0x90a   : > { %3781 = vmatprep.subr.bf16.mxu0 %v4260_v23  ;;  %3809 = vmatprep.subr.bf16.mxu1 %v4261_v58 }
 0x90d   : > { %3782 = vmatpush3.bf16.msra.mxu0 %v4262_v40  ;;  %3810 = vmatpush3.bf16.msra.mxu1 %v4263_v59 }
 0x9c2   : > { %v2689_v28 = vpop.f32.mrb[44].mxu0  ;;  %v2742_v61 = vpop.f32.mrb[36].mxu1 }
 0x9c3   : > { %v2690_v34 = vadd.f32 %v2689_v28, %v5409_v29  ;;  %v2743_v54 = vadd.f32 %v2742_v61, %v5413_v31  ;;  %v2691_v35 = vpop.f32.mrb[45].mxu0  ;;  %v2744_v37 = vpop.f32.mrb[37].mxu1 }
 0x9c4   : > { %v2693_v1 = vpop.f32.mrb[46].mxu0  ;;  %v2746_v39 = vpop.f32.mrb[38].mxu1  ;;  %v5425_v42 = vadd.f32 %v2691_v35, %v5418_v62  ;;  %v5435_v60 = vadd.f32 %v2744_v37, %v5422_v22 }
 0x9c5   : > { %v2777_v26 = vmul.f32 0.044715, %v2690_v34  ;;  %v2779_v8 = vmul.f32 0.044715, %v2743_v54  ;;  %v2694_v5 = vadd.f32 %v2693_v1, %v5409_v29  ;;  %v5429_v21 = vadd.f32 %v2746_v39, %v5413_v31  ;;  %v2695_v24 = vpop.f32.mrb[47].mxu0  ;;  %v2748_v14 = vpop.f32.mrb[39].mxu1 }
 0x9c6   : > { %v5432_v36 = vadd.f32 %v2695_v24, %v5418_v62  ;;  %v5438_v41 = vadd.f32 %v2748_v14, %v5422_v22  ;;  %v5440_v47 = vmul.f32 0.5, %v2690_v34  ;;  %v2778_v15 = vmul.f32 0.044715, %v5425_v42 }
 0x9c7   : > { %v2793_v43 = vmul.f32 %v2777_v26, %v2690_v34  ;;  %v2795_v3 = vmul.f32 %v2779_v8, %v2743_v54  ;;  %v2781_v6 = vmul.f32 0.044715, %v2694_v5  ;;  %v2783_v49 = vmul.f32 0.044715, %v5429_v21 }
 0x9c8   : > { %v2782_v4 = vmul.f32 0.044715, %v5432_v36  ;;  %v5445_v25 = vmul.f32 0.5, %v2743_v54  ;;  %v2780_v2 = vmul.f32 0.044715, %v5435_v60  ;;  %v2794_v53 = vmul.f32 %v2778_v15, %v5425_v42 }
 0x9c9   : > { %v2809_v52 = vmul.f32 %v2793_v43, %v2690_v34  ;;  %v2811_v51 = vmul.f32 %v2795_v3, %v2743_v54  ;;  %v2797_v45 = vmul.f32 %v2781_v6, %v2694_v5  ;;  %v2799_v33 = vmul.f32 %v2783_v49, %v5429_v21 }
 0x9ca   : > { %v2699_v13 = vpop.f32.mrb[48].mxu0  ;;  %v2752_v20 = vpop.f32.mrb[40].mxu1  ;;  %v2784_v48 = vmul.f32 0.044715, %v5438_v41  ;;  %v2798_v17 = vmul.f32 %v2782_v4, %v5432_v36  ;;  %v2796_v57 = vmul.f32 %v2780_v2, %v5435_v60  ;;  %v2810_v37 = vmul.f32 %v2794_v53, %v5425_v42 }
 0x9cb   : > { %v2825_v19 = vadd.f32 %v2809_v52, %v2690_v34  ;;  %v2827_v46 = vadd.f32 %v2811_v51, %v2743_v54  ;;  %v2701_v63 = vpop.f32.mrb[49].mxu0  ;;  %v2754_v0 = vpop.f32.mrb[41].mxu1  ;;  %v2813_v7 = vmul.f32 %v2797_v45, %v2694_v5  ;;  %v5451_v30 = vadd.f32 %v2699_v13, %v5409_v29 }
 0x9cc   : > { %v2703_v50 = vpop.f32.mrb[50].mxu0  ;;  %v2756_v11 = vpop.f32.mrb[42].mxu1  ;;  %v2815_v56 = vmul.f32 %v2799_v33, %v5429_v21  ;;  %v5457_v23 = vadd.f32 %v2752_v20, %v5413_v31  ;;  %v5462_v59 = vadd.f32 %v2701_v63, %v5418_v62  ;;  %v2800_v28 = vmul.f32 %v2784_v48, %v5438_v41 }
 0x9cd   : > { %v2841_v27 = vmul.f32 0.7978846, %v2825_v19  ;;  %v2843_v32 = vmul.f32 0.7978846, %v2827_v46  ;;  %v2705_v10 = vpop.f32.mrb[51].mxu0  ;;  %v2758_v44 = vpop.f32.mrb[43].mxu1  ;;  %v2829_v16 = vadd.f32 %v2813_v7, %v2694_v5  ;;  %v5468_v54 = vadd.f32 %v2754_v0, %v5422_v22 }
 0x9ce   : > { %v2831_v58 = vadd.f32 %v2815_v56, %v5429_v21  ;;  %v2785_v40 = vmul.f32 0.044715, %v5451_v30  ;;  %v2786_v34 = vmul.f32 0.044715, %v5462_v59  ;;  %v5471_v35 = vadd.f32 %v2703_v50, %v5409_v29 }
 0x9cf   : > { %4344 = vtanh.f32 %v2841_v27  ;;  %v2845_v55 = vmul.f32 0.7978846, %v2829_v16  ;;  %v2814_v1 = vmul.f32 %v2798_v17, %v5432_v36  ;;  %v5476_v39 = vadd.f32 %v2756_v11, %v5413_v31 }
 0x9d0   : > { %4346 = vtanh.f32 %v2843_v32  ;;  %v2847_v61 = vmul.f32 0.7978846, %v2831_v58  ;;  %v2801_v26 = vmul.f32 %v2785_v40, %v5451_v30  ;;  %v2787_v8 = vmul.f32 0.044715, %v5457_v23 }
 0x9d1   : > { %4348 = vtanh.f32 %v2845_v55  ;;  %v2788_v24 = vmul.f32 0.044715, %v5468_v54  ;;  %v2765_v14 = vmul.f32 0.5, %v2694_v5  ;;  %v2802_v43 = vmul.f32 %v2786_v34, %v5462_v59 }
 0x9d2   : > { %4350 = vtanh.f32 %v2847_v61  ;;  %v5483_v29 = vadd.f32 %v2705_v10, %v5418_v62  ;;  %v5486_v3 = vadd.f32 %v2758_v44, %v5422_v22  ;;  %v2812_v6 = vmul.f32 %v2796_v57, %v5435_v60 }
 0x9d3   : > { %v2816_v31 = vmul.f32 %v2800_v28, %v5438_v41  ;;  %v2789_v52 = vmul.f32 0.044715, %v5471_v35  ;;  %v2791_v51 = vmul.f32 0.044715, %v5476_v39  ;;  %v2804_v49 = vmul.f32 %v2788_v24, %v5468_v54 }
 0x9d4   : > { %v2790_v5 = vmul.f32 0.044715, %v5483_v29  ;;  %v2792_v15 = vmul.f32 0.044715, %v5486_v3  ;;  %v2826_v62 = vadd.f32 %v2810_v37, %v5425_v42  ;;  %v2767_v45 = vmul.f32 0.5, %v5429_v21 }
 0x9d5   : > { %v2817_v22 = vmul.f32 %v2801_v26, %v5451_v30  ;;  %v2803_v4 = vmul.f32 %v2787_v8, %v5457_v23  ;;  %v2830_v13 = vadd.f32 %v2814_v1, %v5432_v36  ;;  %v2818_v20 = vmul.f32 %v2802_v43, %v5462_v59 }
 0x9d6   : > { %v2806_v19 = vmul.f32 %v2790_v5, %v5483_v29  ;;  %v2808_v46 = vmul.f32 %v2792_v15, %v5486_v3  ;;  %v2842_v33 = vmul.f32 0.7978846, %v2826_v62  ;;  %v2805_v0 = vmul.f32 %v2789_v52, %v5471_v35 }
 0x9d7   : > { %v2846_v2 = vmul.f32 0.7978846, %v2830_v13  ;;  %v2828_v7 = vadd.f32 %v2812_v6, %v5435_v60  ;;  %v2832_v21 = vadd.f32 %v2816_v31, %v5438_v41  ;;  %v2820_v50 = vmul.f32 %v2804_v49, %v5468_v54 }
 0x9d8   : > { %v2807_v11 = vmul.f32 %v2791_v51, %v5476_v39  ;;  %v2822_v27 = vmul.f32 %v2806_v19, %v5483_v29  ;;  %4352 = vtanh.f32 %v2842_v33  ;;  %v2819_v53 = vmul.f32 %v2803_v4, %v5457_v23 }
 0x9d9   : > { %v4345_v63 = vpop.eup %4344  ;;  %4354 = vtanh.f32 %v2846_v2  ;;  %v2844_v32 = vmul.f32 0.7978846, %v2828_v7  ;;  %v2848_v56 = vmul.f32 0.7978846, %v2832_v21  ;;  %v2824_v16 = vmul.f32 %v2808_v46, %v5486_v3 }
 0x9da   : > { %v4347_v48 = vpop.eup %4346  ;;  %v2873_v10 = vadd.f32 1.0, %v4345_v63  ;;  %v2834_v58 = vadd.f32 %v2818_v20, %v5462_v59  ;;  %v2821_v57 = vmul.f32 %v2805_v0, %v5471_v35  ;;  %v2838_v28 = vadd.f32 %v2822_v27, %v5483_v29 }
 0x9db   : > { %v4349_v44 = vpop.eup %4348  ;;  %v2875_v17 = vadd.f32 1.0, %v4347_v48  ;;  %4356 = vtanh.f32 %v2844_v32  ;;  %v2823_v61 = vmul.f32 %v2807_v11, %v5476_v39  ;;  %v2836_v24 = vadd.f32 %v2820_v50, %v5468_v54 }
 0x9dc   : > { %v4351_v40 = vpop.eup %4350  ;;  %v2877_v55 = vadd.f32 1.0, %v4349_v44  ;;  %4358 = vtanh.f32 %v2848_v56  ;;  %v2850_v37 = vmul.f32 0.7978846, %v2834_v58  ;;  %v2889_v1 = vmul.f32 %v2873_v10, %v5440_v47 }
 0x9dd   : > { %v2879_v34 = vadd.f32 1.0, %v4351_v40  ;;  %v2854_v8 = vmul.f32 0.7978846, %v2838_v28  ;;  %v2891_v43 = vmul.f32 %v2875_v17, %v5445_v25  ;;  %v2840_v31 = vadd.f32 %v2824_v16, %v5486_v3 }
 0x9de   : > { %v2893_v26 = vmul.f32 %v2877_v55, %v2765_v14  ;;  %4360 = vtanh.f32 %v2850_v37  ;;  %v2852_v51 = vmul.f32 0.7978846, %v2836_v24  ;;  %v2833_v15 = vadd.f32 %v2817_v22, %v5451_v30 }
 0x9df   : > { %v2895_v6 = vmul.f32 %v2879_v34, %v2767_v45  ;;  %4362 = vtanh.f32 %v2854_v8  ;;  %v2856_v5 = vmul.f32 0.7978846, %v2840_v31  ;;  %v2837_v62 = vadd.f32 %v2821_v57, %v5471_v35 }
 0x9e0   : > { %v2905_v52 = vpack.c.bf16 %v2893_v26, %v2889_v1  ;;  %4364 = vtanh.f32 %v2852_v51  ;;  %v2835_v47 = vadd.f32 %v2819_v53, %v5457_v23  ;;  %v2849_v4 = vmul.f32 0.7978846, %v2833_v15 }
 0x9e1   : > { %v2907_v49 = vpack.c.bf16 %v2895_v6, %v2891_v43  ;;  %4366 = vtanh.f32 %v2856_v5  ;;  %v2853_v25 = vmul.f32 0.7978846, %v2837_v62  ;;  %v2839_v45 = vadd.f32 %v2823_v61, %v5476_v39 }
 0x9e2   : > { %v4353_v14 = vpop.eup %4352  ;;  %v2762_v20 = vmul.f32 0.5, %v5425_v42  ;;  %v2851_v46 = vmul.f32 0.7978846, %v2835_v47  ;;  %v2766_v33 = vmul.f32 0.5, %v5432_v36  ;;  %4368 = vtanh.f32 %v2849_v4 }
 0x9e3   : > { %v4355_v13 = vpop.eup %4354  ;;  %v2874_v19 = vadd.f32 1.0, %v4353_v14  ;;  %v2855_v22 = vmul.f32 0.7978846, %v2839_v45  ;;  %4370 = vtanh.f32 %v2853_v25  ;;  %v2764_v50 = vmul.f32 0.5, %v5435_v60  ;;  %v3646_v25 = vld [vmem:[%s714_s1] ss:$0 sm:$0xff] }
 0x9e4   : > { %v2878_v63 = vadd.f32 1.0, %v4355_v13  ;;  %4372 = vtanh.f32 %v2851_v46  ;;  %v2768_v11 = vmul.f32 0.5, %v5438_v41  ;;  %v2770_v53 = vmul.f32 0.5, %v5462_v59  ;;  %s5630_s1 = sld [smem:[#allocation14_spill]] (!%p3679_p7) }
 0x9e5   : > { %v4357_v0 = vpop.eup %4356  ;;  %v2890_v7 = vmul.f32 %v2874_v19, %v2762_v20  ;;  %4374 = vtanh.f32 %v2855_v22  ;;  %v2774_v16 = vmul.f32 0.5, %v5483_v29  ;;  %v2772_v28 = vmul.f32 0.5, %v5468_v54 }
 0x9e6   : > { %v4359_v2 = vpop.eup %4358  ;;  %v2894_v21 = vmul.f32 %v2878_v63, %v2766_v33  ;;  %v2876_v48 = vadd.f32 1.0, %v4357_v0  ;;  %v2776_v61 = vmul.f32 0.5, %v5486_v3  ;;  %v2769_v43 = vmul.f32 0.5, %v5451_v30 }
 0x9e7   : > { %v2880_v27 = vadd.f32 1.0, %v4359_v2  ;;  %v2773_v6 = vmul.f32 0.5, %v5471_v35  ;;  %v2771_v3 = vmul.f32 0.5, %v5457_v23  ;;  %v2775_v15 = vmul.f32 0.5, %v5476_v39 }
 0x9e8   : > { %v4361_v42 = vpop.eup %4360  ;;  %v2906_v32 = vpack.c.bf16 %v2894_v21, %v2890_v7  ;;  %v2892_v36 = vmul.f32 %v2876_v48, %v2764_v50 }
 0x9e9   : > { %v4363_v56 = vpop.eup %4362  ;;  %v2896_v10 = vmul.f32 %v2880_v27, %v2768_v11  ;;  %v2882_v44 = vadd.f32 1.0, %v4361_v42 }
 0x9ea   : > { %3208 = vmatprep.mubr.bf16.mxu0 %v2906_v32  ;;  %v2886_v17 = vadd.f32 1.0, %v4363_v56  ;;  %v4365_v58 = vpop.eup %4364 }
 0x9eb   : > { %v2908_v40 = vpack.c.bf16 %v2896_v10, %v2892_v36  ;;  %3209 = vmatmul.mubr.bf16.vlgmr.msra.gmra.mrb[52].mxu0 %v2905_v52  ;;  %v4367_v60 = vpop.eup %4366  ;;  %v2898_v57 = vmul.f32 %v2882_v44, %v2770_v53  ;;  %v2884_v55 = vadd.f32 1.0, %v4365_v58 }
 0x9ec   : > { %v2902_v41 = vmul.f32 %v2886_v17, %v2774_v16  ;;  %v2888_v34 = vadd.f32 1.0, %v4367_v60  ;;  %v4369_v37 = vpop.eup %4368 }
 0x9ed   : > { %3257 = vmatprep.mubr.bf16.mxu1 %v2908_v40  ;;  %v4371_v59 = vpop.eup %4370  ;;  %v2900_v26 = vmul.f32 %v2884_v55, %v2772_v28  ;;  %v2881_v8 = vadd.f32 1.0, %v4369_v37 }
 0x9ee   : > { %3258 = vmatmul.mubr.bf16.vlgmr.msra.gmra.mrb[44].mxu1 %v2907_v49  ;;  %v2910_v1 = vpack.c.bf16 %v2902_v41, %v2898_v57  ;;  %v2904_v29 = vmul.f32 %v2888_v34, %v2776_v61  ;;  %v4373_v24 = vpop.eup %4372  ;;  %v2885_v31 = vadd.f32 1.0, %v4371_v59 }
 0x9ef   : > { %v4375_v52 = vpop.eup %4374  ;;  %v2883_v51 = vadd.f32 1.0, %v4373_v24  ;;  %v2897_v5 = vmul.f32 %v2881_v8, %v2769_v43 }
 0x9f0   : > { %3216 = vmatprep.mubr.bf16.mxu0 %v2910_v1  ;;  %v2912_v54 = vpack.c.bf16 %v2904_v29, %v2900_v26  ;;  %v2901_v49 = vmul.f32 %v2885_v31, %v2773_v6  ;;  %v2887_v62 = vadd.f32 1.0, %v4375_v52 }
 0x9f1   : > { %v2899_v14 = vmul.f32 %v2883_v51, %v2771_v3 }
 0x9f2   : > { %3265 = vmatprep.mubr.bf16.mxu1 %v2912_v54  ;;  %v2909_v47 = vpack.c.bf16 %v2901_v49, %v2897_v5  ;;  %v2903_v4 = vmul.f32 %v2887_v62, %v2775_v15 }
 0x9f4   : > { %3217 = vmatmul.mubr.bf16.gmra.mrb[56].mxu0 %v2909_v47  ;;  %v2911_v30 = vpack.c.bf16 %v2903_v4, %v2899_v14 }
 0x9f6   : > { %3266 = vmatmul.mubr.bf16.gmra.mrb[48].mxu1 %v2911_v30 }
 0xabe   : > { %v3783_v35 = vpop.f32.mrb[52].mxu0 }
 0xabf   : > { %v3784_v23 = vpop.f32.mrb[53].mxu0 }
 0xac0   : > { %v3785_v45 = vadd.f32 %v3784_v23, %v3783_v35  ;;  %v3786_v13 = vpop.f32.mrb[54].mxu0 }
 0xac1   : > { %v3811_v20 = vpop.f32.mrb[44].mxu1  ;;  %v3787_v19 = vpop.f32.mrb[55].mxu0 }
 0xac2   : > { %v3211_v39 = vadd.f32 %v3785_v45, %v3646_v25  ;;  %v3812_v46 = vpop.f32.mrb[45].mxu1  ;;  %v3788_v33 = vadd.f32 %v3787_v19, %v3786_v13  ;;  %v3680_v45 = vld [vmem:[%s5630_s1] ss:$0 sm:$0xff] (!%p3679_p7) }
 0xac3   : > { %v3813_v63 = vadd.f32 %v3812_v46, %v3811_v20  ;;  %v3814_v22 = vpop.f32.mrb[46].mxu1  ;;  %v3681_v46 = vld [vmem:[%s5631_s26] ss:$0 sm:$0xff] (!%p3679_p7) }
 0xac4   : > { %v3214_v0 = vadd.f32 %v3788_v33, %v3646_v25  ;;  %v3815_v2 = vpop.f32.mrb[47].mxu1 }
 0xac5   : > { %v3260_v7 = vadd.f32 %v3813_v63, %v3211_v39  ;;  %v3816_v21 = vadd.f32 %v3815_v2, %v3814_v22 }
 0xac7   : > { %v3274_v48 = vadd.f32 %v3260_v7, %v5294_v12  ;;  %v3263_v50 = vadd.f32 %v3816_v21, %v3214_v0  ;;  %v3789_v27 = vpop.f32.mrb[56].mxu0 }
 0xac8   : > { %v3790_v42 = vpop.f32.mrb[57].mxu0 }
 0xac9   : > { %3278 = vst [vmem:[#allocation2] sm:$0xff] %v3274_v48  ;;  %v3275_v11 = vadd.f32 %v3263_v50, %v5296_v18  ;;  %v3817_v32 = vpop.f32.mrb[48].mxu1  ;;  %v3791_v56 = vadd.f32 %v3790_v42, %v3789_v27  ;;  %v3792_v36 = vpop.f32.mrb[58].mxu0  ;;  %3288 = vadd.xlane.f32.xlu0 (!%p3679_p7), %v3274_v48 }
 0xaca   : > { %v3818_v10 = vpop.f32.mrb[49].mxu1  ;;  %v3793_v44 = vpop.f32.mrb[59].mxu0 }
 0xacb   : > { %3279 = vst [vmem:[#allocation2 + $0x8] sm:$0xff] %v3275_v11  ;;  %v3219_v53 = vadd.f32 %v3791_v56, %v3646_v25  ;;  %v3819_v16 = vadd.f32 %v3818_v10, %v3817_v32  ;;  %v3820_v17 = vpop.f32.mrb[50].mxu1  ;;  %v3794_v58 = vadd.f32 %v3793_v44, %v3792_v36 }
 0xacc   : > { %v3821_v40 = vpop.f32.mrb[51].mxu1 }
 0xacd   : > { %v3268_v60 = vadd.f32 %v3819_v16, %v3219_v53  ;;  %v3222_v57 = vadd.f32 %v3794_v58, %v3646_v25  ;;  %v3822_v12 = vadd.f32 %v3821_v40, %v3820_v17  ;;  %3285 = sbr.rel (%p3679_p7) target bundleno = 3087 (0xc0f), region = 100  ;;  %3290 = vadd.xlane.f32.xlu0 (!%p3679_p7), %v3275_v11 }
 0xacf   : > { %v3276_v41 = vadd.f32 %v3268_v60, %v5299_v38  ;;  %v3271_v55 = vadd.f32 %v3822_v12, %v3222_v57 }
 0xad1   : > { %3280 = vst [vmem:[#allocation2 + $0x10] sm:$0xff] %v3276_v41  ;;  %v3277_v18 = vadd.f32 %v3271_v55, %v5303_v9  ;;  %3292 = vadd.xlane.f32.xlu1 (!%p3679_p7), %v3276_v41 }
 0xad3   : > { %3281 = vst [vmem:[#allocation2 + $0x18] sm:$0xff] %v3277_v18 }
 0xad5   : > { %3294 = vadd.xlane.f32.xlu1 %v3277_v18 }
 0xb56   : > { %v3289_v28 = vpop.xlane.xlu0 %3288 }
 0xb57   : > { %v3296_v34 = vmul.f32 0.0078125, %v3289_v28 }
 0xb59   : > { %v3300_v1 = vsub.f32 %v3274_v48, %v3296_v34 }
 0xb5a   : > { %v3291_v26 = vpop.xlane.xlu0 %3290 }
 0xb5b   : > { %v3297_v29 = vmul.f32 0.0078125, %v3291_v26  ;;  %v3304_v8 = vmul.f32 %v3300_v1, %v3300_v1 }
 0xb5d   : > { %v3301_v9 = vsub.f32 %v3275_v11, %v3297_v29  ;;  %3308 = vadd.xlane.f32.xlu0 %v3304_v8 }
 0xb5e   : > { %v3293_v61 = vpop.xlane.xlu1 %3292 }
 0xb5f   : > { %v3298_v37 = vmul.f32 0.0078125, %v3293_v61  ;;  %v3305_v31 = vmul.f32 %v3301_v9, %v3301_v9 }
 0xb61   : > { %v3302_v59 = vsub.f32 %v3276_v41, %v3298_v37  ;;  %3310 = vadd.xlane.f32.xlu1 %v3305_v31 }
 0xb62   : > { %v3295_v38 = vpop.xlane.xlu1 %3294 }
 0xb63   : > { %v3299_v24 = vmul.f32 0.0078125, %v3295_v38  ;;  %v3306_v6 = vmul.f32 %v3302_v59, %v3302_v59 }
 0xb65   : > { %v3303_v43 = vsub.f32 %v3277_v18, %v3299_v24  ;;  %3312 = vadd.xlane.f32.xlu0 %v3306_v6 }
 0xb67   : > { %v3307_v52 = vmul.f32 %v3303_v43, %v3303_v43 }
 0xb69   : > { %3314 = vadd.xlane.f32.xlu1 %v3307_v52 }
 0xbea   : > { %v3309_v54 = vpop.xlane.xlu0 %3308 }
 0xbeb   : > { %v3316_v3 = vmul.f32 0.0078125, %v3309_v54 }
 0xbed   : > { %v3320_v51 = vadd.f32 1e-05, %v3316_v3 }
 0xbee   : > { %v3311_v5 = vpop.xlane.xlu1 %3310 }
 0xbef   : > { %4380 = vrsqrt.f32 %v3320_v51  ;;  %v3317_v15 = vmul.f32 0.0078125, %v3311_v5 }
 0xbf1   : > { %v3321_v47 = vadd.f32 1e-05, %v3317_v15 }
 0xbf2   : > { %v3313_v49 = vpop.xlane.xlu0 %3312 }
 0xbf3   : > { %v3318_v62 = vmul.f32 0.0078125, %v3313_v49  ;;  %4382 = vrsqrt.f32 %v3321_v47 }
 0xbf5   : > { %v3322_v14 = vadd.f32 1e-05, %v3318_v62 }
 0xbf6   : > { %v3315_v4 = vpop.xlane.xlu1 %3314 }
 0xbf7   : > { %v3319_v30 = vmul.f32 0.0078125, %v3315_v4  ;;  %4384 = vrsqrt.f32 %v3322_v14 }
 0xbf9   : > { %v3323_v35 = vadd.f32 1e-05, %v3319_v30  ;;  %v4381_v25 = vpop.eup %4380 }
 0xbfa   : > { %v3328_v23 = vmul.f32 %v4381_v25, %v3300_v1 }
 0xbfb   : > { %4386 = vrsqrt.f32 %v3323_v35 }
 0xbfc   : > { %v3338_v19 = vmul.f32 %v3680_v45, %v3328_v23 }
 0xbfd   : > { %v4383_v13 = vpop.eup %4382 }
 0xbfe   : > { %v3329_v39 = vmul.f32 %v4383_v13, %v3301_v9  ;;  %v3348_v0 = vadd.f32 %v3681_v46, %v3338_v19 }
 0xc00   : > { %v3339_v63 = vmul.f32 %v3680_v45, %v3329_v39 }
 0xc01   : > { %v4385_v20 = vpop.eup %4384 }
 0xc02   : > { %v3330_v33 = vmul.f32 %v4385_v20, %v3302_v59  ;;  %v3349_v2 = vadd.f32 %v3681_v46, %v3339_v63 }
 0xc04   : > { %v3340_v7 = vmul.f32 %v3680_v45, %v3330_v33  ;;  %v3706_v48 = vpack.c.bf16 %v3349_v2, %v3348_v0 }
 0xc05   : > { %v4387_v22 = vpop.eup %4386 }
 0xc06   : > { %v3331_v21 = vmul.f32 %v4387_v22, %v3303_v43  ;;  %3707 = vst [vmem:[%s5632_s21] sm:$0xff] %v3706_v48   ;;  %v3350_v11 = vadd.f32 %v3681_v46, %v3340_v7 }
 0xc08   : > { %v3341_v50 = vmul.f32 %v3680_v45, %v3331_v21 }
 0xc0a   : > { %v3351_v27 = vadd.f32 %v3681_v46, %v3341_v50 }
 0xc0c   : > { %v3711_v42 = vpack.c.bf16 %v3351_v27, %v3350_v11 }
 0xc0e   : > { %3714 = vst [vmem:[%s5633_s23 + $0x8] sm:$0xff] %v3711_v42  }
 0xc0f PF: > { %s5634_s21 = sld [smem:[#allocation11_spill]]  ;;  %s5635_s5 = sld [smem:[#allocation10_spill]] }
 0xc10   : > { %s5636_s20 = sld [smem:[#allocation12_spill]]  ;;  %s5637_s18 = smov %s4508_s19 }
 0xc15   : > { %p28_p12 = scmp.ge.s32.totalorder %s5634_s21, 4   ;;  %s5638_s19 = smov %s5635_s5 }
 0xc17   :  { %30 = sbr.rel (!%p28_p12) target bundleno = 15 (0xf), region = 175 }
 0xc1e   :  { %3383 = vsyncpa [#allocation4], 1 }
 0xc1f   :  { %3385 = vsyncpa [#allocation4 + $0x1], 1 }
 0xc20   :  { %3386 = vsyncpa [#allocation6], 1 }
 0xc21   :  { %3388 = vsyncpa [#allocation6 + $0x1], 1 }

</bundles_post_ra>
